<compile_context>
chip_gen: v7x
topology: tpu7x:2x2x1
jax: 0.10.0
libtpu: 0.0.40
codegen_flags: <defaults>
</compile_context>

<pallas_src>
import functools
import math

import jax
import jax.numpy as jnp
from jax import lax
from jax.experimental import pallas as pl
from jax.experimental.pallas import tpu as pltpu

# ----- small synthetic BertConfig -----
VOCAB = 128
HIDDEN = 32
N_LAYERS = 2
N_HEADS = 2
HEAD_DIM = HIDDEN // N_HEADS
INTERMEDIATE = 64
MAX_POS = 64
TYPE_VOCAB = 2
LN_EPS = 1e-12
NEG_INF = float(jnp.finfo(jnp.float32).min)     # HF "extended attention mask" constant
ATTN_SCALE = 1.0 / math.sqrt(HEAD_DIM)


# -------------------- in-kernel math helpers (plain jnp; lower via Mosaic) ----
def _layernorm(x, g, b):
    mean = jnp.mean(x, axis=-1, keepdims=True)
    var = jnp.mean(jnp.square(x - mean), axis=-1, keepdims=True)
    return (x - mean) * lax.rsqrt(var + LN_EPS) * g + b


def _erf(x):
    # Abramowitz & Stegun 7.1.26, |err| <= 1.5e-7 (~f32 resolution), built only
    # from exp/abs/where so it is guaranteed to lower inside the kernel.
    # TODO(synk): switch to lax.erf once its Mosaic lowering is verified.
    a1, a2, a3, a4, a5 = (0.254829592, -0.284496736, 1.421413741,
                          -1.453152027, 1.061405429)
    p = 0.3275911
    sign = jnp.where(x >= 0.0, 1.0, -1.0)
    ax = jnp.abs(x)
    t = 1.0 / (1.0 + p * ax)
    poly = ((((a5 * t + a4) * t + a3) * t + a2) * t + a1) * t
    return sign * (1.0 - poly * jnp.exp(-ax * ax))


def _gelu_exact(x):
    # BertConfig hidden_act="gelu" (erf form).
    return 0.5 * x * (1.0 + _erf(x * (1.0 / math.sqrt(2.0))))


# -------------------- Pallas kernels --------------------
def _embed_ln_kernel(x_ref, g_ref, b_ref, o_ref):
    o_ref[...] = _layernorm(x_ref[...], g_ref[...], b_ref[...])


def embed_layernorm(x2d, g, b):
    M, H = x2d.shape
    return pl.pallas_call(
        _embed_ln_kernel,
        out_shape=jax.ShapeDtypeStruct((M, H), jnp.float32),
    )(x2d, g, b)


def _layer_kernel(x_ref, idr_ref, idc_ref,
                  wqkv_ref, bqkv_ref, wo_ref, bo_ref, g1_ref, b1_ref,
                  wi_ref, bi_ref, wo2_ref, bo2_ref, g2_ref, b2_ref,
                  o_ref):
    S = x_ref.shape[1]
    x = x_ref[0]                                     # (S, HIDDEN)

    # UniLM prefix-LM mask, built in-kernel: allowed[i, j] = idxs[j] <= idxs[i].
    idx_j = jnp.broadcast_to(idr_ref[0], (S, S))     # key-position cumsum (lanes)
    idx_i = jnp.broadcast_to(idc_ref[0], (S, S))     # query-position cumsum (sublanes)
    neg = jnp.where(idx_j <= idx_i, 0.0, NEG_INF)    # additive mask, HF semantics

    # Fused QKV projection: one MXU pass over x.
    qkv = jnp.dot(x, wqkv_ref[...], preferred_element_type=jnp.float32) + bqkv_ref[...]

    wo = wo_ref[...]
    attn = bo_ref[...]                               # (1, HIDDEN), broadcasts on first add
    for h in range(N_HEADS):
        q_h = qkv[:, h * HEAD_DIM:(h + 1) * HEAD_DIM]
        k_h = qkv[:, HIDDEN + h * HEAD_DIM:HIDDEN + (h + 1) * HEAD_DIM]
        v_h = qkv[:, 2 * HIDDEN + h * HEAD_DIM:2 * HIDDEN + (h + 1) * HEAD_DIM]
        # Contract last dims directly (no explicit k.T relayout before the MXU).
        s = lax.dot_general(q_h, k_h, (((1,), (1,)), ((), ())),
                            preferred_element_type=jnp.float32) * ATTN_SCALE + neg
        m = jnp.max(s, axis=-1, keepdims=True)
        e = jnp.exp(s - m)
        l = jnp.sum(e, axis=-1, keepdims=True)
        p = e / l                                    # exact softmax (parity w/ PyTorch)
        ctx_h = jnp.dot(p, v_h, preferred_element_type=jnp.float32)      # (S, HEAD_DIM)
        # concat-free head merge: concat(ctx) @ wo == sum_h ctx_h @ wo[h*DH:(h+1)*DH]
        attn = attn + jnp.dot(ctx_h, wo[h * HEAD_DIM:(h + 1) * HEAD_DIM, :],
                              preferred_element_type=jnp.float32)

    y = _layernorm(attn + x, g1_ref[...], b1_ref[...])

    hmid = jnp.dot(y, wi_ref[...], preferred_element_type=jnp.float32) + bi_ref[...]
    hmid = _gelu_exact(hmid)
    ffn = jnp.dot(hmid, wo2_ref[...], preferred_element_type=jnp.float32) + bo2_ref[...]
    o_ref[0] = _layernorm(ffn + y, g2_ref[...], b2_ref[...])


def _const_spec(shape):
    zeros = (0,) * len(shape)
    return pl.BlockSpec(shape, lambda b: zeros)      # constant block -> stays VMEM-resident


def bert_layer(x3d, idx_row, idx_col, p):
    B, S, H = x3d.shape
    return pl.pallas_call(
        _layer_kernel,
        grid=(B,),
        in_specs=[
            pl.BlockSpec((1, S, H), lambda b: (b, 0, 0)),
            pl.BlockSpec((1, 1, S), lambda b: (b, 0, 0)),
            pl.BlockSpec((1, S, 1), lambda b: (b, 0, 0)),
            _const_spec(p["wqkv"].shape), _const_spec(p["bqkv"].shape),
            _const_spec(p["wo"].shape), _const_spec(p["bo"].shape),
            _const_spec(p["ln1_g"].shape), _const_spec(p["ln1_b"].shape),
            _const_spec(p["wi"].shape), _const_spec(p["bi"].shape),
            _const_spec(p["wo2"].shape), _const_spec(p["bo2"].shape),
            _const_spec(p["ln2_g"].shape), _const_spec(p["ln2_b"].shape),
        ],
        out_specs=pl.BlockSpec((1, S, H), lambda b: (b, 0, 0)),
        out_shape=jax.ShapeDtypeStruct((B, S, H), jnp.float32),
        compiler_params=pltpu.CompilerParams(dimension_semantics=("parallel",)),
    )(x3d, idx_row, idx_col,
      p["wqkv"], p["bqkv"], p["wo"], p["bo"], p["ln1_g"], p["ln1_b"],
      p["wi"], p["bi"], p["wo2"], p["bo2"], p["ln2_g"], p["ln2_b"])


def _lm_head_kernel(x_ref, w_ref, b_ref, g_ref, bb_ref, emb_ref, db_ref, o_ref):
    # BertLMPredictionHead: dense -> gelu -> LayerNorm -> tied decoder (+ bias).
    h = jnp.dot(x_ref[...], w_ref[...], preferred_element_type=jnp.float32) + b_ref[...]
    h = _gelu_exact(h)
    h = _layernorm(h, g_ref[...], bb_ref[...])
    # Tied decoder: contract on HIDDEN directly against word_emb (VOCAB, HIDDEN);
    # no transposed HBM copy of the embedding table. Output is lane-dense (128).
    o_ref[...] = lax.dot_general(h, emb_ref[...], (((1,), (1,)), ((), ())),
                                 preferred_element_type=jnp.float32) + db_ref[...]


def lm_head(x2d, params):
    M = x2d.shape[0]
    return pl.pallas_call(
        _lm_head_kernel,
        out_shape=jax.ShapeDtypeStruct((M, VOCAB), jnp.float32),
    )(x2d, params["head_dense_w"], params["head_dense_b"],
      params["head_ln_g"], params["head_ln_b"],
      params["word_emb"], params["decoder_bias"])


# -------------------- model glue (plain JAX) --------------------
@functools.partial(jax.jit, static_argnames=("mode",))
def unilm_forward(params, input_ids, input_mask, segment_ids, mode="train"):
    """Returns BertForCausalLM logits of shape (B, S, VOCAB)."""
    assert mode == "train"  # TODO(synk): 'generation' branch (autoregressive .generate) not implemented.
    del input_mask  # unused in the 'train' branch, exactly as in the PyTorch module
    B, S = input_ids.shape

    # UniLM mask indices; the (B,S,S) mask itself is built inside the layer kernel.
    idxs = jnp.cumsum(segment_ids, axis=1).astype(jnp.int32)
    idx_row = idxs.reshape(B, 1, S)   # key-position cumsum
    idx_col = idxs.reshape(B, S, 1)   # query-position cumsum

    # BertEmbeddings: word + position + token_type, then LayerNorm (Pallas).
    x = (params["word_emb"][input_ids]
         + params["pos_emb"][jnp.arange(S)][None, :, :]
         + params["type_emb"][segment_ids])
    x2d = embed_layernorm(x.reshape(B * S, HIDDEN),
                          params["emb_ln_g"], params["emb_ln_b"])
    x3d = x2d.reshape(B, S, HIDDEN)

    for p in params["layers"]:
        x3d = bert_layer(x3d, idx_row, idx_col, p)

    logits = lm_head(x3d.reshape(B * S, HIDDEN), params)
    return logits.reshape(B, S, VOCAB)


# -------------------- deterministic parameter init --------------------
def init_params(key):
    keys = iter(jax.random.split(key, 64))

    def nrm(shape):
        return 0.02 * jax.random.normal(next(keys), shape, jnp.float32)

    params = dict(
        word_emb=nrm((VOCAB, HIDDEN)),
        pos_emb=nrm((MAX_POS, HIDDEN)),
        type_emb=nrm((TYPE_VOCAB, HIDDEN)),
        emb_ln_g=jnp.ones((1, HIDDEN), jnp.float32),
        emb_ln_b=jnp.zeros((1, HIDDEN), jnp.float32),
        head_dense_w=nrm((HIDDEN, HIDDEN)),
        head_dense_b=jnp.zeros((1, HIDDEN), jnp.float32),
        head_ln_g=jnp.ones((1, HIDDEN), jnp.float32),
        head_ln_b=jnp.zeros((1, HIDDEN), jnp.float32),
        decoder_bias=jnp.zeros((1, VOCAB), jnp.float32),
        layers=[],
    )
    for _ in range(N_LAYERS):
        params["layers"].append(
            dict(
                # wq|wk|wv pre-concatenated into one (HIDDEN, 3*HIDDEN) projection.
                wqkv=nrm((HIDDEN, 3 * HIDDEN)),
                bqkv=jnp.zeros((1, 3 * HIDDEN), jnp.float32),
                wo=nrm((HIDDEN, HIDDEN)), bo=jnp.zeros((1, HIDDEN), jnp.float32),
                ln1_g=jnp.ones((1, HIDDEN), jnp.float32),
                ln1_b=jnp.zeros((1, HIDDEN), jnp.float32),
                wi=nrm((HIDDEN, INTERMEDIATE)), bi=jnp.zeros((1, INTERMEDIATE), jnp.float32),
                wo2=nrm((INTERMEDIATE, HIDDEN)), bo2=jnp.zeros((1, HIDDEN), jnp.float32),
                ln2_g=jnp.ones((1, HIDDEN), jnp.float32),
                ln2_b=jnp.zeros((1, HIDDEN), jnp.float32),
            )
        )
    return params


if __name__ == "__main__":
    params = init_params(jax.random.PRNGKey(0))

    B, S = 2, 8
    input_ids = jax.random.randint(jax.random.PRNGKey(1), (B, S), 0, VOCAB, dtype=jnp.int32)
    # UniLM-style segments: first half source (0), second half target (1).
    segment_ids = jnp.broadcast_to((jnp.arange(S) >= S // 2).astype(jnp.int32), (B, S))
    input_mask = jnp.ones((B, S), jnp.float32)  # unused in 'train' mode, kept for signature fidelity

    logits = unilm_forward(params, input_ids, input_mask, segment_ids, mode="train")
    logits = jax.block_until_ready(logits)

    assert logits.shape == (B, S, VOCAB)
    assert bool(jnp.isfinite(logits).all())
    print("KERNEL_OK")
</pallas_src>

<mosaic_0001>
module attributes {stable_mosaic.version = 11 : i64} {
  func.func @_embed_ln_kernel(%arg0: memref<16x32xf32, #tpu.memory_space<vmem>>, %arg1: memref<1x32xf32, #tpu.memory_space<vmem>>, %arg2: memref<1x32xf32, #tpu.memory_space<vmem>>, %arg3: memref<16x32xf32, #tpu.memory_space<vmem>>) attributes {dimension_semantics = [], scalar_prefetch = 0 : i64, scratch_operands = 0 : i64, tpu.core_type = #tpu.core_type<tc>} {
    %c0 = arith.constant 0 : index
    %c0_0 = arith.constant 0 : index
    %0 = vector.load %arg0[%c0, %c0_0] : memref<16x32xf32, #tpu.memory_space<vmem>>, vector<16x32xf32>
    %c0_1 = arith.constant 0 : index
    %c0_2 = arith.constant 0 : index
    %1 = vector.load %arg1[%c0_1, %c0_2] : memref<1x32xf32, #tpu.memory_space<vmem>>, vector<1x32xf32>
    %c0_3 = arith.constant 0 : index
    %c0_4 = arith.constant 0 : index
    %2 = vector.load %arg2[%c0_3, %c0_4] : memref<1x32xf32, #tpu.memory_space<vmem>>, vector<1x32xf32>
    %cst = arith.constant dense<0.000000e+00> : vector<16xf32>
    %3 = vector.multi_reduction <add>, %0, %cst [1] : vector<16x32xf32> to vector<16xf32>
    %4 = vector.shape_cast %3 : vector<16xf32> to vector<16x1xf32>
    %cst_5 = arith.constant 3.200000e+01 : f32
    %5 = vector.broadcast %cst_5 : f32 to vector<16x1xf32>
    %6 = arith.divf %4, %5 : vector<16x1xf32>
    %7 = vector.broadcast %6 : vector<16x1xf32> to vector<16x32xf32>
    %8 = arith.subf %0, %7 : vector<16x32xf32>
    %9 = arith.mulf %8, %8 : vector<16x32xf32>
    %cst_6 = arith.constant dense<0.000000e+00> : vector<16xf32>
    %10 = vector.multi_reduction <add>, %9, %cst_6 [1] : vector<16x32xf32> to vector<16xf32>
    %11 = vector.shape_cast %10 : vector<16xf32> to vector<16x1xf32>
    %cst_7 = arith.constant 3.200000e+01 : f32
    %12 = vector.broadcast %cst_7 : f32 to vector<16x1xf32>
    %13 = arith.divf %11, %12 : vector<16x1xf32>
    %14 = vector.broadcast %6 : vector<16x1xf32> to vector<16x32xf32>
    %15 = arith.subf %0, %14 : vector<16x32xf32>
    %cst_8 = arith.constant 9.99999996E-13 : f32
    %16 = vector.broadcast %cst_8 : f32 to vector<16x1xf32>
    %17 = arith.addf %13, %16 : vector<16x1xf32>
    %18 = math.rsqrt %17 : vector<16x1xf32>
    %19 = vector.broadcast %18 : vector<16x1xf32> to vector<16x32xf32>
    %20 = arith.mulf %15, %19 : vector<16x32xf32>
    %21 = vector.broadcast %1 : vector<1x32xf32> to vector<16x32xf32>
    %22 = arith.mulf %20, %21 : vector<16x32xf32>
    %23 = vector.broadcast %2 : vector<1x32xf32> to vector<16x32xf32>
    %24 = arith.addf %22, %23 : vector<16x32xf32>
    %c0_9 = arith.constant 0 : index
    %c0_10 = arith.constant 0 : index
    %25 = vector.load %arg3[%c0_9, %c0_10] : memref<16x32xf32, #tpu.memory_space<vmem>>, vector<16x32xf32>
    tpu.vector_store %arg3[%c0_9, %c0_10], %24 {strides = array<i32>} : memref<16x32xf32, #tpu.memory_space<vmem>>, vector<16x32xf32>,
    return
  }
}

module attributes {stable_mosaic.version = 11 : i64} {
  func.func @_lm_head_kernel(%arg0: memref<16x32xf32, #tpu.memory_space<vmem>>, %arg1: memref<32x32xf32, #tpu.memory_space<vmem>>, %arg2: memref<1x32xf32, #tpu.memory_space<vmem>>, %arg3: memref<1x32xf32, #tpu.memory_space<vmem>>, %arg4: memref<1x32xf32, #tpu.memory_space<vmem>>, %arg5: memref<128x32xf32, #tpu.memory_space<vmem>>, %arg6: memref<1x128xf32, #tpu.memory_space<vmem>>, %arg7: memref<16x128xf32, #tpu.memory_space<vmem>>) attributes {dimension_semantics = [], scalar_prefetch = 0 : i64, scratch_operands = 0 : i64, tpu.core_type = #tpu.core_type<tc>} {
    %c0 = arith.constant 0 : index
    %c0_0 = arith.constant 0 : index
    %0 = vector.load %arg0[%c0, %c0_0] : memref<16x32xf32, #tpu.memory_space<vmem>>, vector<16x32xf32>
    %c0_1 = arith.constant 0 : index
    %c0_2 = arith.constant 0 : index
    %1 = vector.load %arg1[%c0_1, %c0_2] : memref<32x32xf32, #tpu.memory_space<vmem>>, vector<32x32xf32>
    %cst = arith.constant dense<0.000000e+00> : vector<16x32xf32>
    %2 = tpu.matmul %0, %1, %cst {dimension_numbers = #tpu.dot_dimension_numbers<[1], [0], [0], [1], [0, 0, 1, 1], [], []>} : vector<16x32xf32>, vector<32x32xf32>, vector<16x32xf32> -> vector<16x32xf32>
    %c0_3 = arith.constant 0 : index
    %c0_4 = arith.constant 0 : index
    %3 = vector.load %arg2[%c0_3, %c0_4] : memref<1x32xf32, #tpu.memory_space<vmem>>, vector<1x32xf32>
    %4 = vector.broadcast %3 : vector<1x32xf32> to vector<16x32xf32>
    %5 = arith.addf %2, %4 : vector<16x32xf32>
    %cst_5 = arith.constant 5.000000e-01 : f32
    %6 = vector.broadcast %cst_5 : f32 to vector<16x32xf32>
    %7 = arith.mulf %6, %5 : vector<16x32xf32>
    %cst_6 = arith.constant 0.707106769 : f32
    %8 = vector.broadcast %cst_6 : f32 to vector<16x32xf32>
    %9 = arith.mulf %5, %8 : vector<16x32xf32>
    %cst_7 = arith.constant 0.000000e+00 : f32
    %10 = vector.broadcast %cst_7 : f32 to vector<16x32xf32>
    %11 = arith.cmpf oge, %9, %10 : vector<16x32xf32>
    %cst_8 = arith.constant 1.000000e+00 : f32
    %cst_9 = arith.constant -1.000000e+00 : f32
    %12 = vector.broadcast %cst_8 : f32 to vector<16x32xf32>
    %13 = vector.broadcast %cst_9 : f32 to vector<16x32xf32>
    %14 = arith.select %11, %12, %13 : vector<16x32xi1>, vector<16x32xf32>
    %15 = math.absf %9 : vector<16x32xf32>
    %cst_10 = arith.constant 0.327591091 : f32
    %16 = vector.broadcast %cst_10 : f32 to vector<16x32xf32>
    %17 = arith.mulf %16, %15 : vector<16x32xf32>
    %cst_11 = arith.constant 1.000000e+00 : f32
    %18 = vector.broadcast %cst_11 : f32 to vector<16x32xf32>
    %19 = arith.addf %18, %17 : vector<16x32xf32>
    %cst_12 = arith.constant 1.000000e+00 : f32
    %20 = vector.broadcast %cst_12 : f32 to vector<16x32xf32>
    %21 = arith.divf %20, %19 : vector<16x32xf32>
    %cst_13 = arith.constant 1.06140542 : f32
    %22 = vector.broadcast %cst_13 : f32 to vector<16x32xf32>
    %23 = arith.mulf %22, %21 : vector<16x32xf32>
    %cst_14 = arith.constant -1.45315206 : f32
    %24 = vector.broadcast %cst_14 : f32 to vector<16x32xf32>
    %25 = arith.addf %23, %24 : vector<16x32xf32>
    %26 = arith.mulf %25, %21 : vector<16x32xf32>
    %cst_15 = arith.constant 1.42141378 : f32
    %27 = vector.broadcast %cst_15 : f32 to vector<16x32xf32>
    %28 = arith.addf %26, %27 : vector<16x32xf32>
    %29 = arith.mulf %28, %21 : vector<16x32xf32>
    %cst_16 = arith.constant -0.284496725 : f32
    %30 = vector.broadcast %cst_16 : f32 to vector<16x32xf32>
    %31 = arith.addf %29, %30 : vector<16x32xf32>
    %32 = arith.mulf %31, %21 : vector<16x32xf32>
    %cst_17 = arith.constant 0.254829586 : f32
    %33 = vector.broadcast %cst_17 : f32 to vector<16x32xf32>
    %34 = arith.addf %32, %33 : vector<16x32xf32>
    %35 = arith.mulf %34, %21 : vector<16x32xf32>
    %cst_18 = arith.constant 0.000000e+00 : f32
    %36 = vector.broadcast %cst_18 : f32 to vector<16x32xf32>
    %37 = arith.subf %36, %15 : vector<16x32xf32>
    %38 = arith.mulf %37, %15 : vector<16x32xf32>
    %39 = math.exp %38 : vector<16x32xf32>
    %40 = arith.mulf %35, %39 : vector<16x32xf32>
    %cst_19 = arith.constant 1.000000e+00 : f32
    %41 = vector.broadcast %cst_19 : f32 to vector<16x32xf32>
    %42 = arith.subf %41, %40 : vector<16x32xf32>
    %43 = arith.mulf %14, %42 : vector<16x32xf32>
    %cst_20 = arith.constant 1.000000e+00 : f32
    %44 = vector.broadcast %cst_20 : f32 to vector<16x32xf32>
    %45 = arith.addf %44, %43 : vector<16x32xf32>
    %46 = arith.mulf %7, %45 : vector<16x32xf32>
    %c0_21 = arith.constant 0 : index
    %c0_22 = arith.constant 0 : index
    %47 = vector.load %arg3[%c0_21, %c0_22] : memref<1x32xf32, #tpu.memory_space<vmem>>, vector<1x32xf32>
    %c0_23 = arith.constant 0 : index
    %c0_24 = arith.constant 0 : index
    %48 = vector.load %arg4[%c0_23, %c0_24] : memref<1x32xf32, #tpu.memory_space<vmem>>, vector<1x32xf32>
    %cst_25 = arith.constant dense<0.000000e+00> : vector<16xf32>
    %49 = vector.multi_reduction <add>, %46, %cst_25 [1] : vector<16x32xf32> to vector<16xf32>
    %50 = vector.shape_cast %49 : vector<16xf32> to vector<16x1xf32>
    %cst_26 = arith.constant 3.200000e+01 : f32
    %51 = vector.broadcast %cst_26 : f32 to vector<16x1xf32>
    %52 = arith.divf %50, %51 : vector<16x1xf32>
    %53 = vector.broadcast %52 : vector<16x1xf32> to vector<16x32xf32>
    %54 = arith.subf %46, %53 : vector<16x32xf32>
    %55 = arith.mulf %54, %54 : vector<16x32xf32>
    %cst_27 = arith.constant dense<0.000000e+00> : vector<16xf32>
    %56 = vector.multi_reduction <add>, %55, %cst_27 [1] : vector<16x32xf32> to vector<16xf32>
    %57 = vector.shape_cast %56 : vector<16xf32> to vector<16x1xf32>
    %cst_28 = arith.constant 3.200000e+01 : f32
    %58 = vector.broadcast %cst_28 : f32 to vector<16x1xf32>
    %59 = arith.divf %57, %58 : vector<16x1xf32>
    %60 = vector.broadcast %52 : vector<16x1xf32> to vector<16x32xf32>
    %61 = arith.subf %46, %60 : vector<16x32xf32>
    %cst_29 = arith.constant 9.99999996E-13 : f32
    %62 = vector.broadcast %cst_29 : f32 to vector<16x1xf32>
    %63 = arith.addf %59, %62 : vector<16x1xf32>
    %64 = math.rsqrt %63 : vector<16x1xf32>
    %65 = vector.broadcast %64 : vector<16x1xf32> to vector<16x32xf32>
    %66 = arith.mulf %61, %65 : vector<16x32xf32>
    %67 = vector.broadcast %47 : vector<1x32xf32> to vector<16x32xf32>
    %68 = arith.mulf %66, %67 : vector<16x32xf32>
    %69 = vector.broadcast %48 : vector<1x32xf32> to vector<16x32xf32>
    %70 = arith.addf %68, %69 : vector<16x32xf32>
    %c0_30 = arith.constant 0 : index
    %c0_31 = arith.constant 0 : index
    %71 = vector.load %arg5[%c0_30, %c0_31] : memref<128x32xf32, #tpu.memory_space<vmem>>, vector<128x32xf32>
    %cst_32 = arith.constant dense<0.000000e+00> : vector<16x128xf32>
    %72 = tpu.matmul %70, %71, %cst_32 {dimension_numbers = #tpu.dot_dimension_numbers<[1], [1], [0], [0], [0, 0, 1, 0], [], []>} : vector<16x32xf32>, vector<128x32xf32>, vector<16x128xf32> -> vector<16x128xf32>
    %c0_33 = arith.constant 0 : index
    %c0_34 = arith.constant 0 : index
    %73 = vector.load %arg6[%c0_33, %c0_34] : memref<1x128xf32, #tpu.memory_space<vmem>>, vector<1x128xf32>
    %74 = vector.broadcast %73 : vector<1x128xf32> to vector<16x128xf32>
    %75 = arith.addf %72, %74 : vector<16x128xf32>
    %c0_35 = arith.constant 0 : index
    %c0_36 = arith.constant 0 : index
    %76 = vector.load %arg7[%c0_35, %c0_36] : memref<16x128xf32, #tpu.memory_space<vmem>>, vector<16x128xf32>
    tpu.vector_store %arg7[%c0_35, %c0_36], %75 {strides = array<i32>} : memref<16x128xf32, #tpu.memory_space<vmem>>, vector<16x128xf32>,
    return
  }
}

module attributes {stable_mosaic.version = 11 : i64} {
  func.func @_layer_kernel(%arg0: i32, %arg1: memref<1x8x32xf32, #tpu.memory_space<vmem>>, %arg2: memref<1x1x8xi32, #tpu.memory_space<vmem>>, %arg3: memref<1x8x1xi32, #tpu.memory_space<vmem>>, %arg4: memref<32x96xf32, #tpu.memory_space<vmem>>, %arg5: memref<1x96xf32, #tpu.memory_space<vmem>>, %arg6: memref<32x32xf32, #tpu.memory_space<vmem>>, %arg7: memref<1x32xf32, #tpu.memory_space<vmem>>, %arg8: memref<1x32xf32, #tpu.memory_space<vmem>>, %arg9: memref<1x32xf32, #tpu.memory_space<vmem>>, %arg10: memref<32x64xf32, #tpu.memory_space<vmem>>, %arg11: memref<1x64xf32, #tpu.memory_space<vmem>>, %arg12: memref<64x32xf32, #tpu.memory_space<vmem>>, %arg13: memref<1x32xf32, #tpu.memory_space<vmem>>, %arg14: memref<1x32xf32, #tpu.memory_space<vmem>>, %arg15: memref<1x32xf32, #tpu.memory_space<vmem>>, %arg16: memref<1x8x32xf32, #tpu.memory_space<vmem>>) attributes {dimension_semantics = [#tpu.dimension_semantics<parallel>], iteration_bounds = array<i64: 2>, scalar_prefetch = 0 : i64, scratch_operands = 0 : i64, tpu.core_type = #tpu.core_type<tc>, window_params = [{transform_indices = @transform_0, window_bounds = array<i64: 1, 8, 32>}, {transform_indices = @transform_1, window_bounds = array<i64: 1, 1, 8>}, {transform_indices = @transform_2, window_bounds = array<i64: 1, 8, 1>}, {pipeline_mode = #tpu.pipeline_mode<synchronous>, transform_indices = @transform_3, window_bounds = array<i64: 32, 96>}, {pipeline_mode = #tpu.pipeline_mode<synchronous>, transform_indices = @transform_4, window_bounds = array<i64: 1, 96>}, {pipeline_mode = #tpu.pipeline_mode<synchronous>, transform_indices = @transform_5, window_bounds = array<i64: 32, 32>}, {pipeline_mode = #tpu.pipeline_mode<synchronous>, transform_indices = @transform_6, window_bounds = array<i64: 1, 32>}, {pipeline_mode = #tpu.pipeline_mode<synchronous>, transform_indices = @transform_7, window_bounds = array<i64: 1, 32>}, {pipeline_mode = #tpu.pipeline_mode<synchronous>, transform_indices = @transform_8, window_bounds = array<i64: 1, 32>}, {pipeline_mode = #tpu.pipeline_mode<synchronous>, transform_indices = @transform_9, window_bounds = array<i64: 32, 64>}, {pipeline_mode = #tpu.pipeline_mode<synchronous>, transform_indices = @transform_10, window_bounds = array<i64: 1, 64>}, {pipeline_mode = #tpu.pipeline_mode<synchronous>, transform_indices = @transform_11, window_bounds = array<i64: 64, 32>}, {pipeline_mode = #tpu.pipeline_mode<synchronous>, transform_indices = @transform_12, window_bounds = array<i64: 1, 32>}, {pipeline_mode = #tpu.pipeline_mode<synchronous>, transform_indices = @transform_13, window_bounds = array<i64: 1, 32>}, {pipeline_mode = #tpu.pipeline_mode<synchronous>, transform_indices = @transform_14, window_bounds = array<i64: 1, 32>}, {transform_indices = @transform_15, window_bounds = array<i64: 1, 8, 32>}]} {
    %c0 = arith.constant 0 : index
    %c0_0 = arith.constant 0 : index
    %c0_1 = arith.constant 0 : index
    %0 = vector.load %arg1[%c0, %c0_0, %c0_1] : memref<1x8x32xf32, #tpu.memory_space<vmem>>, vector<1x8x32xf32>
    %1 = vector.shape_cast %0 : vector<1x8x32xf32> to vector<8x32xf32>
    %c0_2 = arith.constant 0 : index
    %c0_3 = arith.constant 0 : index
    %c0_4 = arith.constant 0 : index
    %2 = vector.load %arg2[%c0_2, %c0_3, %c0_4] : memref<1x1x8xi32, #tpu.memory_space<vmem>>, vector<1x1x8xi32>
    %3 = vector.shape_cast %2 : vector<1x1x8xi32> to vector<1x8xi32>
    %4 = vector.shape_cast %3 : vector<1x8xi32> to vector<1x8xi32>
    %5 = vector.broadcast %4 : vector<1x8xi32> to vector<8x8xi32>
    %c0_5 = arith.constant 0 : index
    %c0_6 = arith.constant 0 : index
    %c0_7 = arith.constant 0 : index
    %6 = vector.load %arg3[%c0_5, %c0_6, %c0_7] : memref<1x8x1xi32, #tpu.memory_space<vmem>>, vector<1x8x1xi32>
    %7 = vector.shape_cast %6 : vector<1x8x1xi32> to vector<8x1xi32>
    %8 = vector.shape_cast %7 : vector<8x1xi32> to vector<8x1xi32>
    %9 = vector.broadcast %8 : vector<8x1xi32> to vector<8x8xi32>
    %10 = arith.cmpi sle, %5, %9 : vector<8x8xi32>
    %cst = arith.constant 0.000000e+00 : f32
    %cst_8 = arith.constant -3.40282347E+38 : f32
    %11 = vector.broadcast %cst : f32 to vector<8x8xf32>
    %12 = vector.broadcast %cst_8 : f32 to vector<8x8xf32>
    %13 = arith.select %10, %11, %12 : vector<8x8xi1>, vector<8x8xf32>
    %c0_9 = arith.constant 0 : index
    %c0_10 = arith.constant 0 : index
    %14 = vector.load %arg4[%c0_9, %c0_10] : memref<32x96xf32, #tpu.memory_space<vmem>>, vector<32x96xf32>
    %cst_11 = arith.constant dense<0.000000e+00> : vector<8x96xf32>
    %15 = tpu.matmul %1, %14, %cst_11 {dimension_numbers = #tpu.dot_dimension_numbers<[1], [0], [0], [1], [0, 0, 1, 1], [], []>} : vector<8x32xf32>, vector<32x96xf32>, vector<8x96xf32> -> vector<8x96xf32>
    %c0_12 = arith.constant 0 : index
    %c0_13 = arith.constant 0 : index
    %16 = vector.load %arg5[%c0_12, %c0_13] : memref<1x96xf32, #tpu.memory_space<vmem>>, vector<1x96xf32>
    %17 = vector.broadcast %16 : vector<1x96xf32> to vector<8x96xf32>
    %18 = arith.addf %15, %17 : vector<8x96xf32>
    %c0_14 = arith.constant 0 : index
    %c0_15 = arith.constant 0 : index
    %19 = vector.load %arg6[%c0_14, %c0_15] : memref<32x32xf32, #tpu.memory_space<vmem>>, vector<32x32xf32>
    %c0_16 = arith.constant 0 : index
    %c0_17 = arith.constant 0 : index
    %20 = vector.load %arg7[%c0_16, %c0_17] : memref<1x32xf32, #tpu.memory_space<vmem>>, vector<1x32xf32>
    %21 = vector.extract_strided_slice %18 {offsets = [0, 0], sizes = [8, 16], strides = [1, 1]} : vector<8x96xf32> to vector<8x16xf32>
    %22 = vector.extract_strided_slice %18 {offsets = [0, 32], sizes = [8, 16], strides = [1, 1]} : vector<8x96xf32> to vector<8x16xf32>
    %23 = vector.extract_strided_slice %18 {offsets = [0, 64], sizes = [8, 16], strides = [1, 1]} : vector<8x96xf32> to vector<8x16xf32>
    %cst_18 = arith.constant dense<0.000000e+00> : vector<8x8xf32>
    %24 = tpu.matmul %21, %22, %cst_18 {dimension_numbers = #tpu.dot_dimension_numbers<[1], [1], [0], [0], [0, 0, 1, 0], [], []>} : vector<8x16xf32>, vector<8x16xf32>, vector<8x8xf32> -> vector<8x8xf32>
    %cst_19 = arith.constant 2.500000e-01 : f32
    %25 = vector.broadcast %cst_19 : f32 to vector<8x8xf32>
    %26 = arith.mulf %24, %25 : vector<8x8xf32>
    %27 = arith.addf %26, %13 : vector<8x8xf32>
    %cst_20 = arith.constant dense<0xFF800000> : vector<8xf32>
    %28 = vector.multi_reduction <maximumf>, %27, %cst_20 [1] : vector<8x8xf32> to vector<8xf32>
    %29 = vector.shape_cast %28 : vector<8xf32> to vector<8x1xf32>
    %30 = vector.broadcast %29 : vector<8x1xf32> to vector<8x8xf32>
    %31 = arith.subf %27, %30 : vector<8x8xf32>
    %32 = math.exp %31 : vector<8x8xf32>
    %cst_21 = arith.constant dense<0.000000e+00> : vector<8xf32>
    %33 = vector.multi_reduction <add>, %32, %cst_21 [1] : vector<8x8xf32> to vector<8xf32>
    %34 = vector.shape_cast %33 : vector<8xf32> to vector<8x1xf32>
    %35 = vector.broadcast %34 : vector<8x1xf32> to vector<8x8xf32>
    %36 = arith.divf %32, %35 : vector<8x8xf32>
    %cst_22 = arith.constant dense<0.000000e+00> : vector<8x16xf32>
    %37 = tpu.matmul %36, %23, %cst_22 {dimension_numbers = #tpu.dot_dimension_numbers<[1], [0], [0], [1], [0, 0, 1, 1], [], []>} : vector<8x8xf32>, vector<8x16xf32>, vector<8x16xf32> -> vector<8x16xf32>
    %38 = vector.extract_strided_slice %19 {offsets = [0, 0], sizes = [16, 32], strides = [1, 1]} : vector<32x32xf32> to vector<16x32xf32>
    %cst_23 = arith.constant dense<0.000000e+00> : vector<8x32xf32>
    %39 = tpu.matmul %37, %38, %cst_23 {dimension_numbers = #tpu.dot_dimension_numbers<[1], [0], [0], [1], [0, 0, 1, 1], [], []>} : vector<8x16xf32>, vector<16x32xf32>, vector<8x32xf32> -> vector<8x32xf32>
    %40 = vector.broadcast %20 : vector<1x32xf32> to vector<8x32xf32>
    %41 = arith.addf %40, %39 : vector<8x32xf32>
    %42 = vector.extract_strided_slice %18 {offsets = [0, 16], sizes = [8, 16], strides = [1, 1]} : vector<8x96xf32> to vector<8x16xf32>
    %43 = vector.extract_strided_slice %18 {offsets = [0, 48], sizes = [8, 16], strides = [1, 1]} : vector<8x96xf32> to vector<8x16xf32>
    %44 = vector.extract_strided_slice %18 {offsets = [0, 80], sizes = [8, 16], strides = [1, 1]} : vector<8x96xf32> to vector<8x16xf32>
    %cst_24 = arith.constant dense<0.000000e+00> : vector<8x8xf32>
    %45 = tpu.matmul %42, %43, %cst_24 {dimension_numbers = #tpu.dot_dimension_numbers<[1], [1], [0], [0], [0, 0, 1, 0], [], []>} : vector<8x16xf32>, vector<8x16xf32>, vector<8x8xf32> -> vector<8x8xf32>
    %cst_25 = arith.constant 2.500000e-01 : f32
    %46 = vector.broadcast %cst_25 : f32 to vector<8x8xf32>
    %47 = arith.mulf %45, %46 : vector<8x8xf32>
    %48 = arith.addf %47, %13 : vector<8x8xf32>
    %cst_26 = arith.constant dense<0xFF800000> : vector<8xf32>
    %49 = vector.multi_reduction <maximumf>, %48, %cst_26 [1] : vector<8x8xf32> to vector<8xf32>
    %50 = vector.shape_cast %49 : vector<8xf32> to vector<8x1xf32>
    %51 = vector.broadcast %50 : vector<8x1xf32> to vector<8x8xf32>
    %52 = arith.subf %48, %51 : vector<8x8xf32>
    %53 = math.exp %52 : vector<8x8xf32>
    %cst_27 = arith.constant dense<0.000000e+00> : vector<8xf32>
    %54 = vector.multi_reduction <add>, %53, %cst_27 [1] : vector<8x8xf32> to vector<8xf32>
    %55 = vector.shape_cast %54 : vector<8xf32> to vector<8x1xf32>
    %56 = vector.broadcast %55 : vector<8x1xf32> to vector<8x8xf32>
    %57 = arith.divf %53, %56 : vector<8x8xf32>
    %cst_28 = arith.constant dense<0.000000e+00> : vector<8x16xf32>
    %58 = tpu.matmul %57, %44, %cst_28 {dimension_numbers = #tpu.dot_dimension_numbers<[1], [0], [0], [1], [0, 0, 1, 1], [], []>} : vector<8x8xf32>, vector<8x16xf32>, vector<8x16xf32> -> vector<8x16xf32>
    %59 = vector.extract_strided_slice %19 {offsets = [16, 0], sizes = [16, 32], strides = [1, 1]} : vector<32x32xf32> to vector<16x32xf32>
    %cst_29 = arith.constant dense<0.000000e+00> : vector<8x32xf32>
    %60 = tpu.matmul %58, %59, %cst_29 {dimension_numbers = #tpu.dot_dimension_numbers<[1], [0], [0], [1], [0, 0, 1, 1], [], []>} : vector<8x16xf32>, vector<16x32xf32>, vector<8x32xf32> -> vector<8x32xf32>
    %61 = arith.addf %41, %60 : vector<8x32xf32>
    %62 = arith.addf %61, %1 : vector<8x32xf32>
    %c0_30 = arith.constant 0 : index
    %c0_31 = arith.constant 0 : index
    %63 = vector.load %arg8[%c0_30, %c0_31] : memref<1x32xf32, #tpu.memory_space<vmem>>, vector<1x32xf32>
    %c0_32 = arith.constant 0 : index
    %c0_33 = arith.constant 0 : index
    %64 = vector.load %arg9[%c0_32, %c0_33] : memref<1x32xf32, #tpu.memory_space<vmem>>, vector<1x32xf32>
    %cst_34 = arith.constant dense<0.000000e+00> : vector<8xf32>
    %65 = vector.multi_reduction <add>, %62, %cst_34 [1] : vector<8x32xf32> to vector<8xf32>
    %66 = vector.shape_cast %65 : vector<8xf32> to vector<8x1xf32>
    %cst_35 = arith.constant 3.200000e+01 : f32
    %67 = vector.broadcast %cst_35 : f32 to vector<8x1xf32>
    %68 = arith.divf %66, %67 : vector<8x1xf32>
    %69 = vector.broadcast %68 : vector<8x1xf32> to vector<8x32xf32>
    %70 = arith.subf %62, %69 : vector<8x32xf32>
    %71 = arith.mulf %70, %70 : vector<8x32xf32>
    %cst_36 = arith.constant dense<0.000000e+00> : vector<8xf32>
    %72 = vector.multi_reduction <add>, %71, %cst_36 [1] : vector<8x32xf32> to vector<8xf32>
    %73 = vector.shape_cast %72 : vector<8xf32> to vector<8x1xf32>
    %cst_37 = arith.constant 3.200000e+01 : f32
    %74 = vector.broadcast %cst_37 : f32 to vector<8x1xf32>
    %75 = arith.divf %73, %74 : vector<8x1xf32>
    %76 = vector.broadcast %68 : vector<8x1xf32> to vector<8x32xf32>
    %77 = arith.subf %62, %76 : vector<8x32xf32>
    %cst_38 = arith.constant 9.99999996E-13 : f32
    %78 = vector.broadcast %cst_38 : f32 to vector<8x1xf32>
    %79 = arith.addf %75, %78 : vector<8x1xf32>
    %80 = math.rsqrt %79 : vector<8x1xf32>
    %81 = vector.broadcast %80 : vector<8x1xf32> to vector<8x32xf32>
    %82 = arith.mulf %77, %81 : vector<8x32xf32>
    %83 = vector.broadcast %63 : vector<1x32xf32> to vector<8x32xf32>
    %84 = arith.mulf %82, %83 : vector<8x32xf32>
    %85 = vector.broadcast %64 : vector<1x32xf32> to vector<8x32xf32>
    %86 = arith.addf %84, %85 : vector<8x32xf32>
    %c0_39 = arith.constant 0 : index
    %c0_40 = arith.constant 0 : index
    %87 = vector.load %arg10[%c0_39, %c0_40] : memref<32x64xf32, #tpu.memory_space<vmem>>, vector<32x64xf32>
    %cst_41 = arith.constant dense<0.000000e+00> : vector<8x64xf32>
    %88 = tpu.matmul %86, %87, %cst_41 {dimension_numbers = #tpu.dot_dimension_numbers<[1], [0], [0], [1], [0, 0, 1, 1], [], []>} : vector<8x32xf32>, vector<32x64xf32>, vector<8x64xf32> -> vector<8x64xf32>
    %c0_42 = arith.constant 0 : index
    %c0_43 = arith.constant 0 : index
    %89 = vector.load %arg11[%c0_42, %c0_43] : memref<1x64xf32, #tpu.memory_space<vmem>>, vector<1x64xf32>
    %90 = vector.broadcast %89 : vector<1x64xf32> to vector<8x64xf32>
    %91 = arith.addf %88, %90 : vector<8x64xf32>
    %cst_44 = arith.constant 5.000000e-01 : f32
    %92 = vector.broadcast %cst_44 : f32 to vector<8x64xf32>
    %93 = arith.mulf %92, %91 : vector<8x64xf32>
    %cst_45 = arith.constant 0.707106769 : f32
    %94 = vector.broadcast %cst_45 : f32 to vector<8x64xf32>
    %95 = arith.mulf %91, %94 : vector<8x64xf32>
    %cst_46 = arith.constant 0.000000e+00 : f32
    %96 = vector.broadcast %cst_46 : f32 to vector<8x64xf32>
    %97 = arith.cmpf oge, %95, %96 : vector<8x64xf32>
    %cst_47 = arith.constant 1.000000e+00 : f32
    %cst_48 = arith.constant -1.000000e+00 : f32
    %98 = vector.broadcast %cst_47 : f32 to vector<8x64xf32>
    %99 = vector.broadcast %cst_48 : f32 to vector<8x64xf32>
    %100 = arith.select %97, %98, %99 : vector<8x64xi1>, vector<8x64xf32>
    %101 = math.absf %95 : vector<8x64xf32>
    %cst_49 = arith.constant 0.327591091 : f32
    %102 = vector.broadcast %cst_49 : f32 to vector<8x64xf32>
    %103 = arith.mulf %102, %101 : vector<8x64xf32>
    %cst_50 = arith.constant 1.000000e+00 : f32
    %104 = vector.broadcast %cst_50 : f32 to vector<8x64xf32>
    %105 = arith.addf %104, %103 : vector<8x64xf32>
    %cst_51 = arith.constant 1.000000e+00 : f32
    %106 = vector.broadcast %cst_51 : f32 to vector<8x64xf32>
    %107 = arith.divf %106, %105 : vector<8x64xf32>
    %cst_52 = arith.constant 1.06140542 : f32
    %108 = vector.broadcast %cst_52 : f32 to vector<8x64xf32>
    %109 = arith.mulf %108, %107 : vector<8x64xf32>
    %cst_53 = arith.constant -1.45315206 : f32
    %110 = vector.broadcast %cst_53 : f32 to vector<8x64xf32>
    %111 = arith.addf %109, %110 : vector<8x64xf32>
    %112 = arith.mulf %111, %107 : vector<8x64xf32>
    %cst_54 = arith.constant 1.42141378 : f32
    %113 = vector.broadcast %cst_54 : f32 to vector<8x64xf32>
    %114 = arith.addf %112, %113 : vector<8x64xf32>
    %115 = arith.mulf %114, %107 : vector<8x64xf32>
    %cst_55 = arith.constant -0.284496725 : f32
    %116 = vector.broadcast %cst_55 : f32 to vector<8x64xf32>
    %117 = arith.addf %115, %116 : vector<8x64xf32>
    %118 = arith.mulf %117, %107 : vector<8x64xf32>
    %cst_56 = arith.constant 0.254829586 : f32
    %119 = vector.broadcast %cst_56 : f32 to vector<8x64xf32>
    %120 = arith.addf %118, %119 : vector<8x64xf32>
    %121 = arith.mulf %120, %107 : vector<8x64xf32>
    %cst_57 = arith.constant 0.000000e+00 : f32
    %122 = vector.broadcast %cst_57 : f32 to vector<8x64xf32>
    %123 = arith.subf %122, %101 : vector<8x64xf32>
    %124 = arith.mulf %123, %101 : vector<8x64xf32>
    %125 = math.exp %124 : vector<8x64xf32>
    %126 = arith.mulf %121, %125 : vector<8x64xf32>
    %cst_58 = arith.constant 1.000000e+00 : f32
    %127 = vector.broadcast %cst_58 : f32 to vector<8x64xf32>
    %128 = arith.subf %127, %126 : vector<8x64xf32>
    %129 = arith.mulf %100, %128 : vector<8x64xf32>
    %cst_59 = arith.constant 1.000000e+00 : f32
    %130 = vector.broadcast %cst_59 : f32 to vector<8x64xf32>
    %131 = arith.addf %130, %129 : vector<8x64xf32>
    %132 = arith.mulf %93, %131 : vector<8x64xf32>
    %c0_60 = arith.constant 0 : index
    %c0_61 = arith.constant 0 : index
    %133 = vector.load %arg12[%c0_60, %c0_61] : memref<64x32xf32, #tpu.memory_space<vmem>>, vector<64x32xf32>
    %cst_62 = arith.constant dense<0.000000e+00> : vector<8x32xf32>
    %134 = tpu.matmul %132, %133, %cst_62 {dimension_numbers = #tpu.dot_dimension_numbers<[1], [0], [0], [1], [0, 0, 1, 1], [], []>} : vector<8x64xf32>, vector<64x32xf32>, vector<8x32xf32> -> vector<8x32xf32>
    %c0_63 = arith.constant 0 : index
    %c0_64 = arith.constant 0 : index
    %135 = vector.load %arg13[%c0_63, %c0_64] : memref<1x32xf32, #tpu.memory_space<vmem>>, vector<1x32xf32>
    %136 = vector.broadcast %135 : vector<1x32xf32> to vector<8x32xf32>
    %137 = arith.addf %134, %136 : vector<8x32xf32>
    %138 = arith.addf %137, %86 : vector<8x32xf32>
    %c0_65 = arith.constant 0 : index
    %c0_66 = arith.constant 0 : index
    %139 = vector.load %arg14[%c0_65, %c0_66] : memref<1x32xf32, #tpu.memory_space<vmem>>, vector<1x32xf32>
    %c0_67 = arith.constant 0 : index
    %c0_68 = arith.constant 0 : index
    %140 = vector.load %arg15[%c0_67, %c0_68] : memref<1x32xf32, #tpu.memory_space<vmem>>, vector<1x32xf32>
    %cst_69 = arith.constant dense<0.000000e+00> : vector<8xf32>
    %141 = vector.multi_reduction <add>, %138, %cst_69 [1] : vector<8x32xf32> to vector<8xf32>
    %142 = vector.shape_cast %141 : vector<8xf32> to vector<8x1xf32>
    %cst_70 = arith.constant 3.200000e+01 : f32
    %143 = vector.broadcast %cst_70 : f32 to vector<8x1xf32>
    %144 = arith.divf %142, %143 : vector<8x1xf32>
    %145 = vector.broadcast %144 : vector<8x1xf32> to vector<8x32xf32>
    %146 = arith.subf %138, %145 : vector<8x32xf32>
    %147 = arith.mulf %146, %146 : vector<8x32xf32>
    %cst_71 = arith.constant dense<0.000000e+00> : vector<8xf32>
    %148 = vector.multi_reduction <add>, %147, %cst_71 [1] : vector<8x32xf32> to vector<8xf32>
    %149 = vector.shape_cast %148 : vector<8xf32> to vector<8x1xf32>
    %cst_72 = arith.constant 3.200000e+01 : f32
    %150 = vector.broadcast %cst_72 : f32 to vector<8x1xf32>
    %151 = arith.divf %149, %150 : vector<8x1xf32>
    %152 = vector.broadcast %144 : vector<8x1xf32> to vector<8x32xf32>
    %153 = arith.subf %138, %152 : vector<8x32xf32>
    %cst_73 = arith.constant 9.99999996E-13 : f32
    %154 = vector.broadcast %cst_73 : f32 to vector<8x1xf32>
    %155 = arith.addf %151, %154 : vector<8x1xf32>
    %156 = math.rsqrt %155 : vector<8x1xf32>
    %157 = vector.broadcast %156 : vector<8x1xf32> to vector<8x32xf32>
    %158 = arith.mulf %153, %157 : vector<8x32xf32>
    %159 = vector.broadcast %139 : vector<1x32xf32> to vector<8x32xf32>
    %160 = arith.mulf %158, %159 : vector<8x32xf32>
    %161 = vector.broadcast %140 : vector<1x32xf32> to vector<8x32xf32>
    %162 = arith.addf %160, %161 : vector<8x32xf32>
    %c0_74 = arith.constant 0 : index
    %c0_75 = arith.constant 0 : index
    %c0_76 = arith.constant 0 : index
    %163 = vector.load %arg16[%c0_74, %c0_75, %c0_76] : memref<1x8x32xf32, #tpu.memory_space<vmem>>, vector<1x8x32xf32>
    %164 = vector.shape_cast %163 : vector<1x8x32xf32> to vector<8x32xf32>
    %165 = vector.shape_cast %162 : vector<8x32xf32> to vector<1x8x32xf32>
    tpu.vector_store %arg16[%c0_74, %c0_75, %c0_76], %165 {strides = array<i32>} : memref<1x8x32xf32, #tpu.memory_space<vmem>>, vector<1x8x32xf32>,
    return
  }
  func.func @transform_0(%arg0: i32) -> (i32, i32, i32) {
    %c0_i32 = arith.constant 0 : i32
    %c0_i32_0 = arith.constant 0 : i32
    %c0_i32_1 = arith.constant 0 : i32
    return %arg0, %c0_i32, %c0_i32_0 : i32, i32, i32
  }
  func.func @transform_1(%arg0: i32) -> (i32, i32, i32) {
    %c0_i32 = arith.constant 0 : i32
    %c0_i32_0 = arith.constant 0 : i32
    %c0_i32_1 = arith.constant 0 : i32
    return %arg0, %c0_i32, %c0_i32_0 : i32, i32, i32
  }
  func.func @transform_2(%arg0: i32) -> (i32, i32, i32) {
    %c0_i32 = arith.constant 0 : i32
    %c0_i32_0 = arith.constant 0 : i32
    %c0_i32_1 = arith.constant 0 : i32
    return %arg0, %c0_i32, %c0_i32_0 : i32, i32, i32
  }
  func.func @transform_3(%arg0: i32) -> (i32, i32) {
    %c0_i32 = arith.constant 0 : i32
    %c0_i32_0 = arith.constant 0 : i32
    %c0_i32_1 = arith.constant 0 : i32
    return %c0_i32, %c0_i32_0 : i32, i32
  }
  func.func @transform_4(%arg0: i32) -> (i32, i32) {
    %c0_i32 = arith.constant 0 : i32
    %c0_i32_0 = arith.constant 0 : i32
    %c0_i32_1 = arith.constant 0 : i32
    return %c0_i32, %c0_i32_0 : i32, i32
  }
  func.func @transform_5(%arg0: i32) -> (i32, i32) {
    %c0_i32 = arith.constant 0 : i32
    %c0_i32_0 = arith.constant 0 : i32
    %c0_i32_1 = arith.constant 0 : i32
    return %c0_i32, %c0_i32_0 : i32, i32
  }
  func.func @transform_6(%arg0: i32) -> (i32, i32) {
    %c0_i32 = arith.constant 0 : i32
    %c0_i32_0 = arith.constant 0 : i32
    %c0_i32_1 = arith.constant 0 : i32
    return %c0_i32, %c0_i32_0 : i32, i32
  }
  func.func @transform_7(%arg0: i32) -> (i32, i32) {
    %c0_i32 = arith.constant 0 : i32
    %c0_i32_0 = arith.constant 0 : i32
    %c0_i32_1 = arith.constant 0 : i32
    return %c0_i32, %c0_i32_0 : i32, i32
  }
  func.func @transform_8(%arg0: i32) -> (i32, i32) {
    %c0_i32 = arith.constant 0 : i32
    %c0_i32_0 = arith.constant 0 : i32
    %c0_i32_1 = arith.constant 0 : i32
    return %c0_i32, %c0_i32_0 : i32, i32
  }
  func.func @transform_9(%arg0: i32) -> (i32, i32) {
    %c0_i32 = arith.constant 0 : i32
    %c0_i32_0 = arith.constant 0 : i32
    %c0_i32_1 = arith.constant 0 : i32
    return %c0_i32, %c0_i32_0 : i32, i32
  }
  func.func @transform_10(%arg0: i32) -> (i32, i32) {
    %c0_i32 = arith.constant 0 : i32
    %c0_i32_0 = arith.constant 0 : i32
    %c0_i32_1 = arith.constant 0 : i32
    return %c0_i32, %c0_i32_0 : i32, i32
  }
  func.func @transform_11(%arg0: i32) -> (i32, i32) {
    %c0_i32 = arith.constant 0 : i32
    %c0_i32_0 = arith.constant 0 : i32
    %c0_i32_1 = arith.constant 0 : i32
    return %c0_i32, %c0_i32_0 : i32, i32
  }
  func.func @transform_12(%arg0: i32) -> (i32, i32) {
    %c0_i32 = arith.constant 0 : i32
    %c0_i32_0 = arith.constant 0 : i32
    %c0_i32_1 = arith.constant 0 : i32
    return %c0_i32, %c0_i32_0 : i32, i32
  }
  func.func @transform_13(%arg0: i32) -> (i32, i32) {
    %c0_i32 = arith.constant 0 : i32
    %c0_i32_0 = arith.constant 0 : i32
    %c0_i32_1 = arith.constant 0 : i32
    return %c0_i32, %c0_i32_0 : i32, i32
  }
  func.func @transform_14(%arg0: i32) -> (i32, i32) {
    %c0_i32 = arith.constant 0 : i32
    %c0_i32_0 = arith.constant 0 : i32
    %c0_i32_1 = arith.constant 0 : i32
    return %c0_i32, %c0_i32_0 : i32, i32
  }
  func.func @transform_15(%arg0: i32) -> (i32, i32, i32) {
    %c0_i32 = arith.constant 0 : i32
    %c0_i32_0 = arith.constant 0 : i32
    %c0_i32_1 = arith.constant 0 : i32
    return %arg0, %c0_i32, %c0_i32_0 : i32, i32, i32
  }
}

</mosaic_0001>

<bundles_post_ra>
// kernel: unilm_forward.4
= control target key start
LH: loop header
LB: loop body
LE: loop exit
PB: predicated region body
PF: predicated region fallthrough
CT: control target
= control target key end

     0   :  { %vm18_vm0 = vcmask 261120   ;;  %s118_s0 = inlined_call_operand.vmem [shape: f32[16,32], index: 0, kind: input, shape index: {}]   ;;  %s119_s1 = inlined_call_operand.vmem [shape: f32[1,32], index: 1, kind: input, shape index: {}]   ;;  %s120_s2 = inlined_call_operand.vmem [shape: f32[1,32], index: 2, kind: input, shape index: {}]   ;;  %s121_s3 = inlined_call_operand.vmem [shape: f32[16,32], index: 3, kind: output, shape index: {}]  }
   0x1   :  { %v14_v0 = vld [vmem:[%s118_s0] sm:$0xff]  ;;  %v15_v1 = vld [vmem:[%s118_s0 + $0x8] sm:$0xff] }
   0x2   :  { %v19_v2 = vsel %vm18_vm0, %v14_v0, 0.0  ;;  %v22_v3 = vsel %vm18_vm0, %v15_v1, 0.0  ;;  %v68_v21 = vld [vmem:[%s119_s1] ss:$0 sm:$0xff] }
   0x3   :  { %20 = vadd.xlane.f32.xlu0 %v19_v2  ;;  %v69_v23 = vld [vmem:[%s120_s2] ss:$0 sm:$0xff] }
   0x7   :  { %23 = vadd.xlane.f32.xlu0 %v22_v3 }
  0x90   :  { %v21_v4 = vpop.xlane.xlu0 %20 }
  0x91   :  { %v26_v5 = vmul.f32 0.03125, %v21_v4 }
  0x93   :  { %v28_v6 = vsub.f32 %v14_v0, %v26_v5 }
  0x94   :  { %v24_v7 = vpop.xlane.xlu0 %23 }
  0x95   :  { %v27_v8 = vmul.f32 0.03125, %v24_v7  ;;  %v30_v9 = vmul.f32 %v28_v6, %v28_v6 }
  0x97   :  { %v29_v10 = vsub.f32 %v15_v1, %v27_v8  ;;  %v32_v11 = vsel %vm18_vm0, %v30_v9, 0.0 }
  0x98   :  { %33 = vadd.xlane.f32.xlu1 %v32_v11 }
  0x99   :  { %v31_v12 = vmul.f32 %v29_v10, %v29_v10 }
  0x9b   :  { %v35_v13 = vsel %vm18_vm0, %v31_v12, 0.0 }
  0x9c   :  { %36 = vadd.xlane.f32.xlu1 %v35_v13 }
 0x125   :  { %v34_v14 = vpop.xlane.xlu1 %33 }
 0x126   :  { %v38_v15 = vmul.f32 0.03125, %v34_v14 }
 0x128   :  { %v40_v16 = vadd.f32 1e-12, %v38_v15 }
 0x129   :  { %v37_v17 = vpop.xlane.xlu1 %36 }
 0x12a   :  { %70 = vrsqrt.f32 %v40_v16  ;;  %v39_v18 = vmul.f32 0.03125, %v37_v17 }
 0x12c   :  { %v41_v19 = vadd.f32 1e-12, %v39_v18 }
 0x12e   :  { %72 = vrsqrt.f32 %v41_v19 }
 0x134   :  { %v71_v20 = vpop.eup %70 }
 0x135   :  { %v44_v22 = vmul.f32 %v71_v20, %v28_v6 }
 0x137   :  { %v52_v24 = vmul.f32 %v68_v21, %v44_v22 }
 0x138   :  { %v73_v25 = vpop.eup %72 }
 0x139   :  { %v60_v26 = vadd.f32 %v69_v23, %v52_v24  ;;  %v45_v27 = vmul.f32 %v73_v25, %v29_v10 }
 0x13b   :  { %62 = vst.msk [vmem:[%s121_s3] sm:$0xff] %vm18_vm0, %v60_v26  ;;  %v53_v28 = vmul.f32 %v68_v21, %v45_v27 }
 0x13d   :  { %v61_v29 = vadd.f32 %v69_v23, %v53_v28 }
 0x13f   :  { %63 = vst.msk [vmem:[%s121_s3 + $0x8] sm:$0xff] %vm18_vm0, %v61_v29 }

// kernel: unilm_forward.7
= control target key start
LH: loop header
LB: loop body
LE: loop exit
PB: predicated region body
PF: predicated region fallthrough
CT: control target
= control target key end

     0   :  { %vm40_vm0 = vcmask 261120   ;;  %s761_s0 = inlined_call_operand.vmem [shape: f32[16,32], index: 0, kind: input, shape index: {}]   ;;  %s762_s1 = inlined_call_operand.vmem [shape: f32[32,32], index: 1, kind: input, shape index: {}]   ;;  %s763_s2 = inlined_call_operand.vmem [shape: f32[1,32], index: 2, kind: input, shape index: {}]   ;;  %s764_s3 = inlined_call_operand.vmem [shape: f32[1,32], index: 3, kind: input, shape index: {}]   ;;  %s765_s4 = inlined_call_operand.vmem [shape: f32[1,32], index: 4, kind: input, shape index: {}]   ;;  %s766_s5 = inlined_call_operand.vmem [shape: f32[128,32], index: 5, kind: input, shape index: {}]   ;;  %s767_s6 = inlined_call_operand.vmem [shape: f32[1,128], index: 6, kind: input, shape index: {}]   ;;  %s768_s7 = inlined_call_operand.hbm [shape: f32[16,128], index: 7, kind: output, shape index: {}]  }
   0x1   :  { %v29_v0 = vld [vmem:[%s762_s1] sm:$0xff]  ;;  %v30_v1 = vld [vmem:[%s762_s1 + $0x8] sm:$0xff]  ;;  %v31_v2 = vld [vmem:[%s762_s1 + $0x10] sm:$0xff] }
   0x2   :  { %v485_v3 = vpack.c.bf16 %v30_v1, %v29_v0  ;;  %v32_v4 = vld [vmem:[%s762_s1 + $0x18] sm:$0xff]  ;;  %v27_v5 = vld [vmem:[%s761_s0] sm:$0xff] }
   0x3   :  { %v489_v6 = vpack.c.bf16 %v32_v4, %v31_v2  ;;  %447 = vmatprep.mubr.msk.f32.mxu0 %vm40_vm0, %v27_v5 }
   0x4   :  { %12 = vsyncpa [#allocation3], 0  ;;  %486 = vmatprep.subr.bf16.mxu0 %v485_v3  ;;  %v28_v7 = vld [vmem:[%s761_s0 + $0x8] sm:$0xff]  ;;  %v391_v8 = vld [vmem:[%s763_s2] ss:$0 sm:$0xff]  ;;  %v581_v52 = vmov -1.0  }
   0x5   :  { %488 = vmatpush3.bf16.msra.mxu0 %v485_v3  ;;  %vm652_vm3 = vmpackc.low %vm40_vm0, %vm40_vm0  ;;  %v221_v3 = vld [vmem:[%s766_s5] sm:$0xff]  ;;  %v222_v4 = vld [vmem:[%s766_s5 + $0x8] sm:$0xff] }
   0x6   :  { %490 = vmatprep.subr.bf16.mxu0 %v489_v6  ;;  %v223_v5 = vld [vmem:[%s766_s5 + $0x10] sm:$0xff] }
   0x9   :  { %492 = vmatpush3.bf16.msra.mxu0 %v489_v6  ;;  %v493_v6 = vpack.c.bf16 %v222_v4, %v221_v3 }
   0xb   :  { %495 = vmatprep.subr.msk.bf16.mxu1 %vm652_vm3, %v493_v6 }
   0xc   :  { %448 = vmatmul.mubr.msk.f32.vlgmr.msra.gmra.mrb[0].mxu0 %vm40_vm0, %v28_v7  ;;  %v224_v7 = vld [vmem:[%s766_s5 + $0x18] sm:$0xff]  ;;  %498 = vmatpush3.bf16.xpose.msk.msra.mxu1 %vm652_vm3, %v493_v6 }
  0xdf   :  { %v449_v9 = vpop.f32.mrb[0].mxu0 }
  0xe0   :  { %v119_v10 = vadd.f32 %v449_v9, %v391_v8  ;;  %v113_v11 = vpop.f32.mrb[1].mxu0  ;;  %v225_v9 = vld [vmem:[%s766_s5 + $0x20] sm:$0xff] }
  0xe1   :  { %v114_v12 = vadd.f32 %v391_v8, %v113_v11  ;;  %v499_v8 = vpack.c.bf16 %v224_v7, %v223_v5 }
  0xe2   :  { %v125_v13 = vmul.f32 0.70710677, %v119_v10  ;;  %v123_v61 = vmul.f32 0.5, %v119_v10  ;;  %v226_v10 = vld [vmem:[%s766_s5 + $0x28] sm:$0xff] }
  0xe3   :  { %v124_v14 = vmul.f32 0.70710677, %v114_v12  ;;  %v122_v58 = vmul.f32 0.5, %v114_v12  ;;  %501 = vmatprep.subr.msk.bf16.mxu1 %vm652_vm3, %v499_v8  ;;  %v505_v11 = vpack.c.bf16 %v226_v10, %v225_v9  ;;  %v227_v12 = vld [vmem:[%s766_s5 + $0x30] sm:$0xff] }
  0xe4   :  { %v131_v15 = vand.u32 2147483647, %v125_v13  ;;  %vm127_vm1 = vcmp.ge.f32.partialorder %v125_v13, 0.0  ;;  %504 = vmatpush3.bf16.xpose.msk.msra.mxu1 %vm652_vm3, %v499_v8  ;;  %v228_v13 = vld [vmem:[%s766_s5 + $0x38] sm:$0xff] }
  0xe5   :  { %v130_v16 = vand.u32 2147483647, %v124_v14  ;;  %vm126_vm2 = vcmp.ge.f32.partialorder %v124_v14, 0.0  ;;  %v129_v53 = vsel %vm127_vm1, 1.0, %v581_v52  ;;  %507 = vmatprep.subr.msk.bf16.mxu1 %vm652_vm3, %v505_v11  ;;  %v511_v14 = vpack.c.bf16 %v228_v13, %v227_v12 }
  0xe6   :  { %v133_v17 = vmul.f32 0.3275911, %v131_v15  ;;  %v159_v21 = vsub.f32 0.0, %v131_v15  ;;  %v128_v55 = vsel %vm126_vm2, 1.0, %v581_v52 }
  0xe7   :  { %v132_v18 = vmul.f32 0.3275911, %v130_v16  ;;  %v158_v22 = vsub.f32 0.0, %v130_v16 }
  0xe8   :  { %v135_v19 = vadd.f32 1.0, %v133_v17  ;;  %v161_v24 = vmul.f32 %v159_v21, %v131_v15  ;;  %v229_v15 = vld [vmem:[%s766_s5 + $0x40] sm:$0xff] }
  0xe9   :  { %v134_v20 = vadd.f32 1.0, %v132_v18  ;;  %v160_v26 = vmul.f32 %v158_v22, %v130_v16  ;;  %v230_v16 = vld [vmem:[%s766_s5 + $0x48] sm:$0xff] }
  0xea   :  { %545 = vrcp.f32 %v135_v19  ;;  %v164_v30 = vmul.f32 1.442695, %v161_v24  ;;  %v517_v17 = vpack.c.bf16 %v230_v16, %v229_v15 }
  0xeb   :  { %547 = vrcp.f32 %v134_v20  ;;  %v162_v32 = vmul.f32 1.442695, %v160_v26 }
  0xec   :  { %549 = vpow2.f32 %v164_v30  ;;  %510 = vmatpush3.bf16.xpose.msk.msra.mxu1 %vm652_vm3, %v505_v11 }
  0xed   :  { %551 = vpow2.f32 %v162_v32  ;;  %513 = vmatprep.subr.msk.bf16.mxu1 %vm652_vm3, %v511_v14  ;;  %v234_v32 = vld [vmem:[%s766_s5 + $0x68] sm:$0xff] }
  0xf4   :  { %v546_v23 = vpop.eup %545  ;;  %516 = vmatpush3.bf16.xpose.msk.msra.mxu1 %vm652_vm3, %v511_v14 }
  0xf5   :  { %v548_v25 = vpop.eup %547  ;;  %v141_v27 = vmul.f32 1.0614054, %v546_v23  ;;  %519 = vmatprep.subr.msk.bf16.mxu1 %vm652_vm3, %v517_v17 }
  0xf6   :  { %v140_v28 = vmul.f32 1.0614054, %v548_v25  ;;  %v550_v46 = vpop.eup %549 }
  0xf7   :  { %v143_v29 = vadd.f32 -1.4531521, %v141_v27  ;;  %v552_v48 = vpop.eup %551 }
  0xf8   :  { %v142_v31 = vadd.f32 -1.4531521, %v140_v28  ;;  %v231_v28 = vld [vmem:[%s766_s5 + $0x50] sm:$0xff] }
  0xf9   :  { %v145_v33 = vmul.f32 %v546_v23, %v143_v29  ;;  %v232_v29 = vld [vmem:[%s766_s5 + $0x58] sm:$0xff] }
  0xfa   :  { %v144_v34 = vmul.f32 %v548_v25, %v142_v31  ;;  %v523_v30 = vpack.c.bf16 %v232_v29, %v231_v28  ;;  %v233_v31 = vld [vmem:[%s766_s5 + $0x60] sm:$0xff] }
  0xfb   :  { %v147_v35 = vadd.f32 1.4214138, %v145_v33  ;;  %v529_v33 = vpack.c.bf16 %v234_v32, %v233_v31 }
  0xfc   :  { %v146_v36 = vadd.f32 1.4214138, %v144_v34  ;;  %522 = vmatpush3.bf16.xpose.msk.msra.mxu1 %vm652_vm3, %v517_v17  ;;  %v235_v34 = vld [vmem:[%s766_s5 + $0x70] sm:$0xff] }
  0xfd   :  { %v149_v37 = vmul.f32 %v546_v23, %v147_v35  ;;  %525 = vmatprep.subr.msk.bf16.mxu1 %vm652_vm3, %v523_v30  ;;  %v236_v35 = vld [vmem:[%s766_s5 + $0x78] sm:$0xff] }
  0xfe   :  { %v148_v38 = vmul.f32 %v548_v25, %v146_v36  ;;  %v535_v36 = vpack.c.bf16 %v236_v35, %v235_v34 }
  0xff   :  { %v151_v39 = vadd.f32 -0.28449672, %v149_v37 }
 0x100   :  { %v150_v40 = vadd.f32 -0.28449672, %v148_v38 }
 0x101   :  { %v153_v41 = vmul.f32 %v546_v23, %v151_v39 }
 0x102   :  { %v152_v42 = vmul.f32 %v548_v25, %v150_v40 }
 0x103   :  { %v155_v43 = vadd.f32 0.2548296, %v153_v41 }
 0x104   :  { %v154_v44 = vadd.f32 0.2548296, %v152_v42  ;;  %528 = vmatpush3.bf16.xpose.msk.msra.mxu1 %vm652_vm3, %v523_v30 }
 0x105   :  { %v157_v45 = vmul.f32 %v546_v23, %v155_v43  ;;  %531 = vmatprep.subr.msk.bf16.mxu1 %vm652_vm3, %v529_v33 }
 0x106   :  { %v156_v47 = vmul.f32 %v548_v25, %v154_v44  ;;  %v394_v44 = vld [vmem:[%s764_s3] ss:$0 sm:$0xff]  ;;  %s582_s3 = smov [#allocation2]  }
 0x107   :  { %v167_v49 = vmul.f32 %v550_v46, %v157_v45  ;;  %v395_v46 = vld [vmem:[%s765_s4] ss:$0 sm:$0xff]  ;;  %s380_s23 = sshll.u32 %s582_s3, 4  ;;  %s381_s23 = int_to_ptr.vmem [resolvable:$true] %s380_s23 }
 0x108   :  { %v166_v50 = vmul.f32 %v552_v48, %v156_v47  ;;  %s557_s4 = scalar_lea.vmem %s381_s23, 256  ;;  %p562_p1 = scmp.lt.s32.totalorder %s381_s23, %s381_s23 }
 0x109   :  { %v169_v51 = vsub.f32 1.0, %v167_v49  ;;  %p558_p0 = scmp.ne.s32.totalorder %s381_s23, %s557_s4  ;;  %p563_p2 = scmp.lt.s32.totalorder %s557_s4, %s557_s4 }
 0x10a   :  { %v168_v54 = vsub.f32 1.0, %v166_v50 }
 0x10b   :  { %v171_v56 = vmul.f32 %v169_v51, %v129_v53  ;;  %v396_v53 = vld [vmem:[%s767_s6] ss:$0 sm:$0xff]  ;;  %p564_p3 = por %p563_p2, %p562_p1 }
 0x10c   :  { %v170_v57 = vmul.f32 %v168_v54, %v128_v55  ;;  %534 = vmatpush3.bf16.xpose.msk.msra.mxu1 %vm652_vm3, %v529_v33 }
 0x10d   :  { %v173_v60 = vadd.f32 1.0, %v171_v56  ;;  %537 = vmatprep.subr.msk.bf16.mxu1 %vm652_vm3, %v535_v36  ;;  %p565_p4 = pnand %p564_p3, %p558_p0 }
 0x10e   :  { %v172_v59 = vadd.f32 1.0, %v170_v57 }
 0x10f   :  { %v175_v0 = vmul.f32 %v173_v60, %v123_v61 }
 0x110   :  { %v174_v62 = vmul.f32 %v172_v59, %v122_v58 }
 0x111   :  { %v181_v1 = vsel %vm40_vm0, %v175_v0, 0.0 }
 0x112   :  { %v178_v63 = vsel %vm40_vm0, %v174_v62, 0.0 }
 0x113   :  { %179 = vadd.xlane.f32.xlu0 %v178_v63 }
 0x114   :  { %540 = vmatpush3.bf16.xpose.msk.msra.mxu1 %vm652_vm3, %v535_v36 }
 0x117   :  { %182 = vadd.xlane.f32.xlu0 %v181_v1 }
 0x1a0   :  { %v180_v18 = vpop.xlane.xlu0 %179 }
 0x1a1   :  { %v185_v19 = vmul.f32 0.03125, %v180_v18 }
 0x1a3   :  { %v187_v20 = vsub.f32 %v174_v62, %v185_v19 }
 0x1a4   :  { %v183_v21 = vpop.xlane.xlu0 %182 }
 0x1a5   :  { %v186_v22 = vmul.f32 0.03125, %v183_v21  ;;  %v189_v23 = vmul.f32 %v187_v20, %v187_v20 }
 0x1a7   :  { %v188_v24 = vsub.f32 %v175_v0, %v186_v22  ;;  %v191_v25 = vsel %vm40_vm0, %v189_v23, 0.0 }
 0x1a8   :  { %192 = vadd.xlane.f32.xlu1 %v191_v25 }
 0x1a9   :  { %v190_v26 = vmul.f32 %v188_v24, %v188_v24 }
 0x1ab   :  { %v194_v27 = vsel %vm40_vm0, %v190_v26, 0.0 }
 0x1ac   :  { %195 = vadd.xlane.f32.xlu1 %v194_v27 }
 0x235   :  { %v193_v37 = vpop.xlane.xlu1 %192 }
 0x236   :  { %v197_v38 = vmul.f32 0.03125, %v193_v37 }
 0x238   :  { %v199_v39 = vadd.f32 1e-12, %v197_v38 }
 0x239   :  { %v196_v40 = vpop.xlane.xlu1 %195 }
 0x23a   :  { %553 = vrsqrt.f32 %v199_v39  ;;  %v198_v41 = vmul.f32 0.03125, %v196_v40 }
 0x23c   :  { %v200_v42 = vadd.f32 1e-12, %v198_v41 }
 0x23e   :  { %555 = vrsqrt.f32 %v200_v42 }
 0x244   :  { %v554_v43 = vpop.eup %553 }
 0x245   :  { %v203_v45 = vmul.f32 %v554_v43, %v187_v20 }
 0x247   :  { %v211_v47 = vmul.f32 %v394_v44, %v203_v45 }
 0x248   :  { %v556_v48 = vpop.eup %555 }
 0x249   :  { %v204_v49 = vmul.f32 %v556_v48, %v188_v24  ;;  %v219_v50 = vadd.f32 %v395_v46, %v211_v47 }
 0x24b   :  { %v212_v51 = vmul.f32 %v394_v44, %v204_v49  ;;  %482 = vmatprep.mubr.msk.f32.mxu1 %vm40_vm0, %v219_v50 }
 0x24d   :  { %v220_v52 = vadd.f32 %v395_v46, %v212_v51 }
 0x24f   :  { %483 = vmatmul.mubr.msk.f32.vlgmr.msra.gmra.mrb[0].mxu1 %vm40_vm0, %v220_v52 }
 0x322   :  { %v484_v54 = vpop.f32.mrb[0].mxu1 }
 0x323   :  { %v370_v55 = vadd.f32 %v484_v54, %v396_v53  ;;  %v364_v56 = vpop.f32.mrb[1].mxu1 }
 0x324   :  { %v365_v57 = vadd.f32 %v396_v53, %v364_v56 }
 0x325   :  { %374 = vst [vmem:[#allocation2 + $0x8] sm:$0xff] %v370_v55 }
 0x326   :  { %373 = vst [vmem:[#allocation2] sm:$0xff] %v365_v57 }
 0x327   :  { %568 = shalt.err (!%p565_p4)
}
 0x328   :  { %s569_s6 = scalar_lea.hbm %s768_s7, 256 }
 0x329   :  { %p570_p5 = scmp.ne.s32.totalorder %s768_s7, %s569_s6  ;;  %p573_p6 = scmp.lt.u32.totalorder %s569_s6, %s768_s7 }
 0x32b   :  { %p575_p7 = pnand %p573_p6, %p570_p5 }
 0x32d   :  { %578 = shalt.err (!%p575_p7)
}
 0x32e   :  { %s583_s30 = smov 128   ;;  %s584_s8 = smov 8  }
 0x32f   :  { %386 = dma.vmem_to_hbm [thread:$0]  %s381_s23, 256, %s768_s7, [#allocation3], %s583_s30, %s583_s30, %s584_s8  }
 0x330   :  { %579 = dma.done.wait [#allocation3], 256  }
 0x331   :  { %580 = vsyncadd [#allocation3], 4294967040 }
 0x332   :  { %390 = vsyncpa [#allocation3], 1 }

// kernel: unilm_forward.5
= control target key start
LH: loop header
LB: loop body
LE: loop exit
PB: predicated region body
PF: predicated region fallthrough
CT: control target
= control target key end

     0   :  { %s1751_s18 = smov 0   ;;  %s1930_s0 = inlined_call_operand.vmem [shape: f32[2,8,32], index: 0, kind: input, shape index: {}]   ;;  %s1931_s1 = inlined_call_operand.vmem [shape: s32[2,1,8], index: 1, kind: input, shape index: {}]   ;;  %s1932_s2 = inlined_call_operand.vmem [shape: s32[2,8,1], index: 2, kind: input, shape index: {}]   ;;  %s1933_s3 = inlined_call_operand.vmem [shape: f32[32,96], index: 3, kind: input, shape index: {}]   ;;  %s1934_s4 = inlined_call_operand.vmem [shape: f32[1,96], index: 4, kind: input, shape index: {}]   ;;  %s1935_s5 = inlined_call_operand.vmem [shape: f32[32,32], index: 5, kind: input, shape index: {}]   ;;  %s1936_s6 = inlined_call_operand.vmem [shape: f32[1,32], index: 6, kind: input, shape index: {}]   ;;  %s1937_s7 = inlined_call_operand.vmem [shape: f32[1,32], index: 7, kind: input, shape index: {}]   ;;  %s1938_s8 = inlined_call_operand.vmem [shape: f32[1,32], index: 8, kind: input, shape index: {}]   ;;  %s1939_s9 = inlined_call_operand.vmem [shape: f32[32,64], index: 9, kind: input, shape index: {}]   ;;  %s1940_s10 = inlined_call_operand.vmem [shape: f32[1,64], index: 10, kind: input, shape index: {}]   ;;  %s1941_s11 = inlined_call_operand.vmem [shape: f32[64,32], index: 11, kind: input, shape index: {}]   ;;  %s1942_s12 = inlined_call_operand.vmem [shape: f32[1,32], index: 12, kind: input, shape index: {}]   ;;  %s1943_s13 = inlined_call_operand.vmem [shape: f32[1,32], index: 13, kind: input, shape index: {}]   ;;  %s1944_s14 = inlined_call_operand.vmem [shape: f32[1,32], index: 14, kind: input, shape index: {}]   ;;  %s1945_s15 = inlined_call_operand.vmem [shape: f32[2,8,32], index: 15, kind: output, shape index: {}]  }
   0x1 LB: > { %s1448_s19 = sadd.s32 4294967295, %s1658_s18   ;;  %p1452_p0 = scmp.ge.s32.totalorder %s1658_s18, 1  ;;  %s1658_s18 = sphi %s1751_s18, %s25_s18  }
   0x2   : > { %p453_p1 = scmp.lt.s32.totalorder %s1658_s18, 3 }
   0x4   : > { %p454_p2 = pnand %p1452_p0, %p453_p1 }
   0x5   : > { %v533_v0 = vld [vmem:[%s1933_s3] sm:$0xff] (!%p454_p2)  ;;  %v534_v1 = vld [vmem:[%s1933_s3 + $0x8] sm:$0xff] (!%p454_p2)  ;;  %v535_v2 = vld [vmem:[%s1933_s3 + $0x10] sm:$0xff] (!%p454_p2)  ;;  %v1660_v3 = vmov (!%p454_p2), 0.0|0.0   ;;  %vm1661_vm0 = vmmov (!%p454_p2), 0   ;;  %v1662_v6 = vmov (!%p454_p2), 0.0  }
   0x6   : > { %457 = sbr.rel (%p454_p2) target bundleno = 2945 (0xb81), region = 80  ;;  %1586 = vmatprep.subr.bf16.mxu0 (!%p454_p2), %v1660_v3  ;;  %v1587_v4 = vpack.c.bf16 (!%p454_p2), %v534_v1, %v533_v0  ;;  %v536_v5 = vld [vmem:[%s1933_s3 + $0x18] sm:$0xff] (!%p454_p2)  ;;  %1519 = vmatprep.mubr.msk.f32.mxu0 (!%p454_p2), %vm1661_vm0, %v1662_v6  ;;  %p506_p3 = scmp.lt.s32.totalorder (!%p454_p2), %s1448_s19, 1  ;;  %vm544_vm1 = vcmask (!%p454_p2), 261120   ;;  %v1663_v9 = vmov (!%p454_p2), 0   ;;  %vm626_vm2 = vcmask (!%p454_p2), 130048  }
   0x7   : > { %1527 = vmatprep.subr.mxu1 (!%p454_p2), %v1662_v6  ;;  %1529 = vmatprep.mubr.msk.f32.mxu1 (!%p454_p2), %vm1661_vm0, %v1662_v6  ;;  %v1590_v7 = vpack.c.bf16 (!%p454_p2), %v536_v5, %v535_v2  ;;  %v1457_v10 = vld [vmem:[%s1934_s4] ss:$0 sm:$0xff] (!%p454_p2)  ;;  %s1664_s24 = smov (!%p454_p2), 96   ;;  %s1665_s25 = smov (!%p454_p2), 80   ;;  %v1667_v18 = vmov (!%p454_p2), -3.4028235e+38  }
   0x8   : > { %1588 = vmatpush3.bf16.msra.mxu0 (!%p454_p2), %v1587_v4  ;;  %1635 = vset.pattern.permute.xlu0 (!%p454_p2), %v1663_v9  ;;  %s1666_s26 = smov (!%p454_p2), 112   ;;  %vm703_vm4 = vcmask (!%p454_p2), 64512   ;;  %v618_v30 = vld [vmem:[%s1935_s5] sm:$0xff] (!%p454_p2)  ;;  %v619_v31 = vld [vmem:[%s1935_s5 + $0x8] sm:$0xff] (!%p454_p2)  ;;  %s1669_s22 = smov (!%p454_p2), 48   ;;  %v620_v52 = vld [vmem:[%s1935_s5 + $0x10] sm:$0xff] (!%p454_p2) }
   0x9   : > { %1589 = vmatprep.subr.bf16.mxu0 (!%p454_p2), %v1660_v3  ;;  %v1593_v32 = vpack.c.bf16 (!%p454_p2), %v619_v31, %v618_v30  ;;  %v621_v53 = vld [vmem:[%s1935_s5 + $0x18] sm:$0xff] (!%p454_p2)  ;;  %v1463_v62 = vld [vmem:[%s1936_s6] ss:$0 sm:$0xff] (!%p454_p2)  ;;  %vm1269_vm6 = vcmask (!%p454_p2), 523264  }
   0xa   : > { %v1596_v54 = vpack.c.bf16 (!%p454_p2), %v621_v53, %v620_v52  ;;  %v1257_v30 = vld [vmem:[%s1941_s11 + $0x18] sm:$0xff] (!%p454_p2) }
   0xc   : > { %1591 = vmatpush3.bf16.msra.mxu0 (!%p454_p2), %v1590_v7 }
   0xd   : > { %s1947_s19 = smov (!%p506_p3, %s1448_s19), 1  ;;  %1522 = vmatprep.subr.mxu0 %v1662_v6 }
   0xe   : > { %s1781_s28 = sshll.u32 %s1947_s19, 3  ;;  %s512_s30 = scalar_lea.vmem %s1931_s1, %s1947_s19 }
   0xf   : > { %s509_s16 = scalar_lea.vmem %s1930_s0, %s1781_s28  ;;  %s516_s23 = scalar_lea.vmem %s1932_s2, %s1781_s28  ;;  %v1456_v16 = vld [vmem:[%s512_s30] ss:$0 sm:$0xff] }
  0x10   : > { %v1787_v8 = vld [vmem:[%s509_s16] sm:$0xff]  ;;  %s1668_s19 = smov 64   ;;  %s520_s29 = scalar_lea.vmem %s1945_s15, %s1781_s28 }
  0x11   : > { %1520 = vmatmul.mubr.msk.f32.vlgmr.msra.gmra.mrb[0].mxu0 %vm544_vm1, %v1787_v8  ;;  %v527_v14 = vld [vmem:[%s516_s23] sm:$0xff] }
  0x12   : > { %1524 = vmatprep.mubr.msk.f32.mxu0 %vm1661_vm0, %v1662_v6 }
  0xe4   : > { %v614_v11 = vpop.f32.mrb[0].mxu0 }
  0xe5   : > { %v1797_v12 = vadd.f32 %v1457_v10, %v614_v11  ;;  %v1521_v13 = vpop.f32.mrb[1].mxu0 }
  0xe6   : > { %v1144_v13 = vld [vmem:[%s1939_s9 + $0x8] sm:$0xff] }
  0xe7   : > { %624 = vrot.lane.b32.xlu0 %v1797_v12, %s1664_s24 }
  0xeb   : > { %529 = vperm.xlu0 %1635, %v527_v14  }
  0xef   : > { %873 = vrot.lane.b32.xlu0 %v1797_v12, %s1665_s25 }
  0xf3   : > { %871 = vrot.lane.b32.xlu0 %v1797_v12, %s1666_s26 }
 0x159   : > { %v625_v15 = vpop.permute.xlu0 %624 }
 0x15a   : > { %1523 = vmatpush3.xpose.msk.msra.mxu0 %vm626_vm2, %v625_v15  ;;  %v1146_v15 = vld [vmem:[%s1939_s9 + $0x18] sm:$0xff] }
 0x15b   : > { %1592 = vmatprep.subr.bf16.mxu0 %v1660_v3 }
 0x15d   : > { %1525 = vmatmul.mubr.msk.f32.vlgmr.msra.gmra.mrb[2].mxu0 %vm626_vm2, %v1797_v12 }
 0x15e   : > { %1536 = vmatprep.mubr.msk.f32.mxu0 %vm1661_vm0, %v1662_v6  ;;  %1594 = vmatpush3.bf16.msra.mxu0 %v1593_v32  ;;  %v1258_v32 = vld [vmem:[%s1941_s11 + $0x20] sm:$0xff] }
 0x15f   : > { %1544 = vmatprep.subr.mxu0 %v1662_v6 }
 0x16a   : > { %v530_v17 = vpop.permute.xlu0 %529 }
 0x16b   : > { %vm531_vm3 = vcmp.le.s32.totalorder %v1456_v16, %v530_v17 }
 0x16c   : > { %v532_v19 = vsel %vm531_vm3, 0.0, %v1667_v18 }
 0x16e   : > { %v874_v36 = vpop.permute.xlu0 %873 }
 0x172   : > { %v872_v38 = vpop.permute.xlu0 %871 }
 0x230   : > { %v697_v20 = vpop.f32.mrb[2].mxu0 }
 0x231   : > { %v701_v21 = vmul.f32 0.25, %v697_v20  ;;  %v1526_v22 = vpop.f32.mrb[3].mxu0 }
 0x233   : > { %v702_v23 = vadd.f32 %v701_v21, %v532_v19  ;;  %v1468_v21 = vld [vmem:[%s1937_s7] ss:$0 sm:$0xff] }
 0x235   : > { %v704_v24 = vsel %vm703_vm4, %v702_v23, -inf }
 0x236   : > { %705 = vmax.xlane.f32.xlu1 %v704_v24 }
 0x2c3   : > { %v706_v25 = vpop.xlane.xlu1 %705 }
 0x2c4   : > { %v707_v26 = vsub.f32 %v702_v23, %v706_v25  ;;  %v1469_v23 = vld [vmem:[%s1938_s8] ss:$0 sm:$0xff] }
 0x2c6   : > { %v708_v27 = vmul.f32 1.442695, %v707_v26  ;;  %v1254_v26 = vld [vmem:[%s1941_s11] sm:$0xff] }
 0x2c8   : > { %1636 = vpow2.f32 %v708_v27  ;;  %v1255_v27 = vld [vmem:[%s1941_s11 + $0x8] sm:$0xff] }
 0x2d2   : > { %v1637_v28 = vpop.eup %1636 }
 0x2d3   : > { %v710_v29 = vsel %vm703_vm4, %v1637_v28, 0.0 }
 0x2d4   : > { %711 = vadd.xlane.f32.xlu1 %v710_v29  ;;  %v1256_v29 = vld [vmem:[%s1941_s11 + $0x10] sm:$0xff] }
 0x2d5   : > { %v1608_v31 = vpack.c.bf16 %v1257_v30, %v1256_v29 }
 0x2e5   : > { %715 = vrot.lane.b32.xlu1 %v1797_v12, %s1668_s19 }
 0x361   : > { %v712_v33 = vpop.xlane.xlu1 %711 }
 0x362   : > { %1638 = vrcp.f32 %v712_v33  ;;  %v1259_v33 = vld [vmem:[%s1941_s11 + $0x28] sm:$0xff] }
 0x365   : > { %v716_v34 = vpop.permute.xlu1 %715 }
 0x366   : > { %1528 = vmatpush3.msra.mxu1 %v716_v34  ;;  %v1611_v34 = vpack.c.bf16 %v1259_v33, %v1258_v32 }
 0x367   : > { %1539 = vmatprep.subr.mxu1 %v1662_v6 }
 0x36c   : > { %v1639_v35 = vpop.eup %1638 }
 0x36d   : > { %v714_v37 = vmul.f32 %v1639_v35, %v1637_v28  ;;  %v1605_v28 = vpack.c.bf16 %v1255_v27, %v1254_v26  ;;  %v1260_v35 = vld [vmem:[%s1941_s11 + $0x30] sm:$0xff] }
 0x36f   : > { %1530 = vmatmul.mubr.msk.f32.vlgmr.msra.gmra.mrb[0].mxu1 %vm703_vm4, %v714_v37 }
 0x370   : > { %1540 = vmatpush3.xpose.msk.msra.mxu1 %vm626_vm2, %v874_v36  ;;  %1541 = vmatprep.mubr.msk.f32.mxu1 %vm1661_vm0, %v1662_v6  ;;  %v1261_v36 = vld [vmem:[%s1941_s11 + $0x38] sm:$0xff] }
 0x371   : > { %1595 = vmatprep.subr.bf16.mxu1 %v1660_v3  ;;  %v1614_v37 = vpack.c.bf16 %v1261_v36, %v1260_v35 }
 0x373   : > { %1542 = vmatmul.mubr.msk.f32.vlgmr.msra.gmra.mrb[2].mxu1 %vm626_vm2, %v872_v38  ;;  %v1470_v38 = vld [vmem:[%s1940_s10] ss:$0 sm:$0xff] }
 0x374   : > { %1553 = vmatprep.mubr.msk.f32.mxu1 %vm1661_vm0, %v1662_v6  ;;  %1597 = vmatpush3.bf16.msra.mxu1 %v1596_v54 }
 0x375   : > { %1604 = vmatprep.subr.bf16.mxu1 %v1660_v3 }
 0x442   : > { %v787_v39 = vpop.f32.mrb[0].mxu1 }
 0x443   : > { %v1531_v40 = vpop.f32.mrb[1].mxu1  ;;  %1537 = vmatmul.mubr.msk.f32.vlgmr.msra.gmra.mrb[4].mxu0 %vm626_vm2, %v787_v39 }
 0x444   : > { %1546 = vmatprep.mubr.msk.f32.mxu0 %vm1661_vm0, %v1662_v6 }
 0x446   : > { %v945_v41 = vpop.f32.mrb[2].mxu1 }
 0x447   : > { %v949_v42 = vmul.f32 0.25, %v945_v41  ;;  %v1543_v43 = vpop.f32.mrb[3].mxu1 }
 0x449   : > { %v950_v44 = vadd.f32 %v949_v42, %v532_v19 }
 0x44b   : > { %v951_v45 = vsel %vm703_vm4, %v950_v44, -inf }
 0x44c   : > { %952 = vmax.xlane.f32.xlu0 %v951_v45 }
 0x462   : > { %962 = vrot.lane.b32.xlu0 %v1797_v12, %s1669_s22 }
 0x4d9   : > { %v953_v46 = vpop.xlane.xlu0 %952 }
 0x4da   : > { %v954_v47 = vsub.f32 %v950_v44, %v953_v46 }
 0x4dc   : > { %v955_v48 = vmul.f32 1.442695, %v954_v47 }
 0x4dd   : > { %v963_v49 = vpop.permute.xlu0 %962 }
 0x4de   : > { %1640 = vpow2.f32 %v955_v48  ;;  %1545 = vmatpush3.msra.mxu0 %v963_v49 }
 0x4df   : > { %1598 = vmatprep.subr.bf16.mxu0 %v1660_v3 }
 0x4e8   : > { %v1641_v50 = vpop.eup %1640 }
 0x4e9   : > { %v957_v51 = vsel %vm703_vm4, %v1641_v50, 0.0 }
 0x4ea   : > { %958 = vadd.xlane.f32.xlu1 %v957_v51 }
 0x516   : > { %v860_v55 = vpop.f32.mrb[4].mxu0 }
 0x517   : > { %v1538_v56 = vpop.f32.mrb[5].mxu0  ;;  %v870_v63 = vadd.f32 %v1463_v62, %v860_v55 }
 0x577   : > { %v959_v57 = vpop.xlane.xlu1 %958 }
 0x578   : > { %1642 = vrcp.f32 %v959_v57 }
 0x582   : > { %v1643_v58 = vpop.eup %1642 }
 0x583   : > { %v961_v59 = vmul.f32 %v1643_v58, %v1641_v50 }
 0x585   : > { %1547 = vmatmul.mubr.msk.f32.vlgmr.msra.gmra.mrb[6].mxu0 %vm703_vm4, %v961_v59 }
 0x586   : > { %1564 = vmatprep.mubr.msk.f32.mxu0 %vm1661_vm0, %v1662_v6 }
 0x658   : > { %v1034_v60 = vpop.f32.mrb[6].mxu0 }
 0x659   : > { %v1548_v61 = vpop.f32.mrb[7].mxu0  ;;  %1554 = vmatmul.mubr.msk.f32.vlgmr.msra.gmra.mrb[4].mxu1 %vm626_vm2, %v1034_v60 }
 0x65a   : > { %1583 = vmatprep.mubr.msk.f32.mxu1 %vm1661_vm0, %v1662_v6  ;;  %v1143_v6 = vld [vmem:[%s1939_s9] sm:$0xff]  ;;  %1606 = vmatpush3.bf16.msra.mxu1 %v1605_v28  ;;  %v1670_v61 = vmov -1.0  }
 0x65b   : > { %v1599_v14 = vpack.c.bf16 %v1144_v13, %v1143_v6  ;;  %1607 = vmatprep.subr.bf16.mxu1 %v1660_v3 }
 0x65d   : > { %1600 = vmatpush3.bf16.msra.mxu0 %v1599_v14 }
 0x65e   : > { %1601 = vmatprep.subr.bf16.mxu0 %v1660_v3  ;;  %1609 = vmatpush3.bf16.msra.mxu1 %v1608_v31 }
 0x65f   : > { %1610 = vmatprep.subr.bf16.mxu1 %v1660_v3 }
 0x662   : > { %1612 = vmatpush3.bf16.msra.mxu1 %v1611_v34 }
 0x663   : > { %1613 = vmatprep.subr.bf16.mxu1 %v1660_v3 }
 0x666   : > { %1615 = vmatpush3.bf16.msra.mxu1 %v1614_v37 }
 0x72c   : > { %v1107_v0 = vpop.f32.mrb[4].mxu1 }
 0x72d   : > { %v1111_v1 = vadd.f32 %v1107_v0, %v870_v63  ;;  %v1555_v2 = vpop.f32.mrb[5].mxu1 }
 0x72f   : > { %v1112_v4 = vadd.f32 %v1111_v1, %v1787_v8  ;;  %v1145_v8 = vld [vmem:[%s1939_s9 + $0x10] sm:$0xff] }
 0x730   : > { %v1602_v16 = vpack.c.bf16 %v1146_v15, %v1145_v8 }
 0x731   : > { %v1115_v5 = vsel %vm544_vm1, %v1112_v4, 0.0 }
 0x732   : > { %1116 = vadd.xlane.f32.xlu1 %v1115_v5  ;;  %1603 = vmatpush3.bf16.msra.mxu0 %v1602_v16 }
 0x7bf   : > { %v1117_v7 = vpop.xlane.xlu1 %1116 }
 0x7c0   : > { %v1119_v9 = vmul.f32 0.03125, %v1117_v7 }
 0x7c2   : > { %v1120_v10 = vsub.f32 %v1112_v4, %v1119_v9  ;;  %v1472_v4 = vld [vmem:[%s1942_s12] ss:$0 sm:$0xff] }
 0x7c4   : > { %v1121_v11 = vmul.f32 %v1120_v10, %v1120_v10 }
 0x7c6   : > { %v1122_v12 = vsel %vm544_vm1, %v1121_v11, 0.0 }
 0x7c7   : > { %1123 = vadd.xlane.f32.xlu1 %v1122_v12 }
 0x854   : > { %v1124_v17 = vpop.xlane.xlu1 %1123 }
 0x855   : > { %v1125_v18 = vmul.f32 0.03125, %v1124_v17 }
 0x857   : > { %v1126_v19 = vadd.f32 1e-12, %v1125_v18 }
 0x859   : > { %1644 = vrsqrt.f32 %v1126_v19  ;;  %v1474_v19 = vld [vmem:[%s1943_s13] ss:$0 sm:$0xff] }
 0x863   : > { %v1645_v20 = vpop.eup %1644 }
 0x864   : > { %v1128_v22 = vmul.f32 %v1645_v20, %v1120_v10 }
 0x866   : > { %v1135_v24 = vmul.f32 %v1468_v21, %v1128_v22  ;;  %v1475_v21 = vld [vmem:[%s1944_s14] ss:$0 sm:$0xff] }
 0x868   : > { %v1142_v25 = vadd.f32 %v1469_v23, %v1135_v24 }
 0x86a   : > { %1565 = vmatmul.mubr.msk.f32.vlgmr.msra.gmra.mrb[8].mxu0 %vm544_vm1, %v1142_v25 }
 0x93d   : > { %v1223_v39 = vpop.f32.mrb[8].mxu0 }
 0x93e   : > { %v1224_v40 = vadd.f32 %v1470_v38, %v1223_v39  ;;  %v1566_v41 = vpop.f32.mrb[9].mxu0 }
 0x940   : > { %v1228_v42 = vmul.f32 0.70710677, %v1224_v40  ;;  %v1227_v0 = vmul.f32 0.5, %v1224_v40 }
 0x942   : > { %v1231_v43 = vand.u32 2147483647, %v1228_v42  ;;  %vm1229_vm5 = vcmp.ge.f32.partialorder %v1228_v42, 0.0 }
 0x943   : > { %v1230_v62 = vsel %vm1229_vm5, 1.0, %v1670_v61 }
 0x944   : > { %v1232_v3 = vmul.f32 0.3275911, %v1231_v43  ;;  %v1245_v45 = vsub.f32 0.0, %v1231_v43 }
 0x946   : > { %v1233_v44 = vadd.f32 1.0, %v1232_v3  ;;  %v1246_v47 = vmul.f32 %v1245_v45, %v1231_v43 }
 0x948   : > { %1646 = vrcp.f32 %v1233_v44  ;;  %v1247_v50 = vmul.f32 1.442695, %v1246_v47 }
 0x94a   : > { %1648 = vpow2.f32 %v1247_v50 }
 0x952   : > { %v1647_v46 = vpop.eup %1646 }
 0x953   : > { %v1236_v48 = vmul.f32 1.0614054, %v1647_v46 }
 0x954   : > { %v1649_v58 = vpop.eup %1648 }
 0x955   : > { %v1237_v49 = vadd.f32 -1.4531521, %v1236_v48 }
 0x957   : > { %v1238_v51 = vmul.f32 %v1647_v46, %v1237_v49 }
 0x959   : > { %v1239_v52 = vadd.f32 1.4214138, %v1238_v51 }
 0x95b   : > { %v1240_v53 = vmul.f32 %v1647_v46, %v1239_v52 }
 0x95d   : > { %v1241_v54 = vadd.f32 -0.28449672, %v1240_v53 }
 0x95f   : > { %v1242_v55 = vmul.f32 %v1647_v46, %v1241_v54 }
 0x961   : > { %v1243_v56 = vadd.f32 0.2548296, %v1242_v55 }
 0x963   : > { %v1244_v57 = vmul.f32 %v1647_v46, %v1243_v56 }
 0x965   : > { %v1249_v59 = vmul.f32 %v1649_v58, %v1244_v57 }
 0x967   : > { %v1250_v60 = vsub.f32 1.0, %v1249_v59 }
 0x969   : > { %v1251_v63 = vmul.f32 %v1250_v60, %v1230_v62 }
 0x96b   : > { %v1252_v1 = vadd.f32 1.0, %v1251_v63 }
 0x96d   : > { %v1253_v2 = vmul.f32 %v1252_v1, %v1227_v0 }
 0x96f   : > { %1584 = vmatmul.mubr.msk.f32.vlgmr.msra.gmra.mrb[6].mxu1 %vm1269_vm6, %v1253_v2 }
 0xa42   : > { %v1339_v5 = vpop.f32.mrb[6].mxu1 }
 0xa43   : > { %v1340_v7 = vadd.f32 %v1472_v4, %v1339_v5  ;;  %v1585_v9 = vpop.f32.mrb[7].mxu1 }
 0xa45   : > { %v1343_v10 = vadd.f32 %v1340_v7, %v1142_v25 }
 0xa47   : > { %v1346_v11 = vsel %vm544_vm1, %v1343_v10, 0.0 }
 0xa48   : > { %1347 = vadd.xlane.f32.xlu1 %v1346_v11 }
 0xad5   : > { %v1348_v12 = vpop.xlane.xlu1 %1347 }
 0xad6   : > { %v1349_v6 = vmul.f32 0.03125, %v1348_v12 }
 0xad8   : > { %v1350_v13 = vsub.f32 %v1343_v10, %v1349_v6 }
 0xada   : > { %v1351_v14 = vmul.f32 %v1350_v13, %v1350_v13 }
 0xadc   : > { %v1352_v8 = vsel %vm544_vm1, %v1351_v14, 0.0 }
 0xadd   : > { %1353 = vadd.xlane.f32.xlu0 %v1352_v8 }
 0xb6a   : > { %v1354_v15 = vpop.xlane.xlu0 %1353 }
 0xb6b   : > { %v1355_v16 = vmul.f32 0.03125, %v1354_v15 }
 0xb6d   : > { %v1356_v17 = vadd.f32 1e-12, %v1355_v16 }
 0xb6f   : > { %1650 = vrsqrt.f32 %v1356_v17 }
 0xb79   : > { %v1651_v18 = vpop.eup %1650 }
 0xb7a   : > { %v1358_v20 = vmul.f32 %v1651_v18, %v1350_v13 }
 0xb7c   : > { %v1365_v22 = vmul.f32 %v1474_v19, %v1358_v20 }
 0xb7e   : > { %v1372_v23 = vadd.f32 %v1475_v21, %v1365_v22 }
 0xb80   : > { %1373 = vst.msk [vmem:[%s520_s29] sm:$0xff] %vm544_vm1, %v1372_v23 }
 0xb81 PF: > { %s25_s18 = sadd.s32 1, %s1658_s18  }
 0xb82   : > { %p22_p4 = scmp.ge.s32.totalorder %s25_s18, 4  }
 0xb84   :  { %24 = sbr.rel (!%p22_p4) target bundleno = 1 (0x1), region = 116 }

</bundles_post_ra>
